<compile_context>
chip_gen: v7x
topology: tpu7x:2x2x1
jax: 0.10.0
libtpu: 0.0.40
codegen_flags: <defaults>
</compile_context>

<pallas_src>
import functools

import jax
import jax.numpy as jnp
from jax import lax
from jax.experimental import pallas as pl
from jax.experimental.pallas import tpu as pltpu


# ---------------------------------------------------------------------------
# In-kernel math helpers (traced inside the Pallas kernel body)
# ---------------------------------------------------------------------------
def _layernorm(f, w, b, eps=1e-5):
    mu = jnp.mean(f, axis=-1, keepdims=True)
    var = jnp.mean((f - mu) ** 2, axis=-1, keepdims=True)
    return (f - mu) * lax.rsqrt(var + eps) * w + b


_SQRT_2_OVER_PI = 0.7978845608028654


def _gelu_tanh(x):
    # tanh-approximate GELU: the tanh runs on the EUP (its own bundle slot)
    # instead of a ~15-op erf polynomial on the VALU; ~1e-3 tail diff vs torch.
    return 0.5 * x * (1.0 + jnp.tanh(_SQRT_2_OVER_PI * (x + 0.044715 * x * x * x)))


def _mha(q, k_scr, v_scr, wo_hm_ref, bias, heads, d_head, scale, kv_chunk):
    """Multi-head attention for one query tile.

    q           : (tn, inner) f32 query projection (full-width MXU matmul).
    k_scr/v_scr : (Nk, inner) bf16 VMEM scratch — per-batch K/V cache.
    wo_hm_ref   : (heads, d_head, D) bf16 head-major to_out slabs.
    Returns (tn, D) f32 = to_out(softmax(q k^T * scale) v) + bias.

    The key axis is walked in static kv_chunk-sized chunks with an online
    softmax so VMEM stays O(tn * kv_chunk) however large Nk is.  Per-head
    operands are read-only lane slices of the full-width Q / K / V cache
    (projections stay full-width for MXU fill); head outputs go straight
    through the head-major Wo slabs into a lane-dense (tn, D) f32 accumulator,
    so there are no masked per-head partial stores.
    """
    # TODO(synk): optional key-padding mask (CrossAttention mask=...) not implemented.
    tn = q.shape[0]
    dim_out = wo_hm_ref.shape[-1]
    kv_len = k_scr.shape[0]
    n_chunks = kv_len // kv_chunk

    q16 = (q * scale).astype(jnp.bfloat16)          # fold softmax scale once
    out = jnp.zeros((tn, dim_out), jnp.float32)

    for h in range(heads):                           # static trace-time unroll
        lo = h * d_head
        qs = q16[:, lo:lo + d_head]
        m_i = l_i = acc = None
        for c in range(n_chunks):                    # static unroll over key chunks
            r0 = c * kv_chunk
            ks = k_scr[r0:r0 + kv_chunk, lo:lo + d_head]
            vs = v_scr[r0:r0 + kv_chunk, lo:lo + d_head]
            sim = lax.dot_general(qs, ks, (((1,), (1,)), ((), ())),
                                  preferred_element_type=jnp.float32)
            m_c = jnp.max(sim, axis=-1, keepdims=True)
            if c == 0:
                m_i = m_c
                p = jnp.exp(sim - m_i)
                l_i = jnp.sum(p, axis=-1, keepdims=True)
                acc = jnp.dot(p.astype(jnp.bfloat16), vs,
                              preferred_element_type=jnp.float32)
            else:
                m_new = jnp.maximum(m_i, m_c)
                alpha = jnp.exp(m_i - m_new)
                p = jnp.exp(sim - m_new)
                l_i = alpha * l_i + jnp.sum(p, axis=-1, keepdims=True)
                acc = alpha * acc + jnp.dot(p.astype(jnp.bfloat16), vs,
                                            preferred_element_type=jnp.float32)
                m_i = m_new
        ctx_h = (acc * pl.reciprocal(l_i, approx=True)).astype(jnp.bfloat16)
        out = out + jnp.dot(ctx_h, wo_hm_ref[h],
                            preferred_element_type=jnp.float32)
    return out + bias


# ---------------------------------------------------------------------------
# Pallas kernel: BasicTransformerBlock forward for one (batch, query-tile)
# ---------------------------------------------------------------------------
def block_kernel(x_ref, xfull_ref, ctx_ref,
                 ln1w_ref, ln1b_ref, wq1_ref, wk1_ref, wv1_ref, wo1_ref, bo1_ref,
                 ln2w_ref, ln2b_ref, wq2_ref, wk2_ref, wv2_ref, wo2_ref, bo2_ref,
                 ln3w_ref, ln3b_ref, w1a_ref, b1a_ref, w1g_ref, b1g_ref,
                 w2_ref, b2_ref,
                 out_ref,
                 k1_scr, v1_scr, k2_scr, v2_scr,
                 *, heads, d_head, kv_chunk_self, kv_chunk_cross):
    scale = d_head ** (-0.5)

    # ---- Per-batch K/V cache fill (runs once per batch: first query tile) --
    # Full-width (MXU-filling) projections, results stored bf16 in VMEM and
    # reused by every query tile of this batch.
    @pl.when(pl.program_id(1) == 0)
    def _fill_kv_cache():
        xf = xfull_ref[0].astype(jnp.float32)
        f1 = _layernorm(xf, ln1w_ref[...], ln1b_ref[...]).astype(jnp.bfloat16)
        k1_scr[...] = jnp.dot(f1, wk1_ref[...],
                              preferred_element_type=jnp.float32).astype(jnp.bfloat16)
        v1_scr[...] = jnp.dot(f1, wv1_ref[...],
                              preferred_element_type=jnp.float32).astype(jnp.bfloat16)
        ctx = ctx_ref[0].astype(jnp.bfloat16)
        k2_scr[...] = jnp.dot(ctx, wk2_ref[...],
                              preferred_element_type=jnp.float32).astype(jnp.bfloat16)
        v2_scr[...] = jnp.dot(ctx, wv2_ref[...],
                              preferred_element_type=jnp.float32).astype(jnp.bfloat16)

    x = x_ref[0].astype(jnp.float32)                       # (tn, D) tile

    # ---- x = attn1(norm1(x)) + x : self-attention over the full point set --
    f1q = _layernorm(x, ln1w_ref[...], ln1b_ref[...]).astype(jnp.bfloat16)
    q1 = jnp.dot(f1q, wq1_ref[...], preferred_element_type=jnp.float32)
    x = x + _mha(q1, k1_scr, v1_scr, wo1_ref, bo1_ref[...],
                 heads, d_head, scale, kv_chunk_self)

    # ---- x = attn2(norm2(x), context) + x : cross-attention ----------------
    f2q = _layernorm(x, ln2w_ref[...], ln2b_ref[...]).astype(jnp.bfloat16)
    q2 = jnp.dot(f2q, wq2_ref[...], preferred_element_type=jnp.float32)
    x = x + _mha(q2, k2_scr, v2_scr, wo2_ref, bo2_ref[...],
                 heads, d_head, scale, kv_chunk_cross)

    # ---- x = ff(norm3(x)) + x : GEGLU (Dropout is identity in eval) --------
    f3 = _layernorm(x, ln3w_ref[...], ln3b_ref[...]).astype(jnp.bfloat16)
    a = jnp.dot(f3, w1a_ref[...], preferred_element_type=jnp.float32) + b1a_ref[...]
    g = jnp.dot(f3, w1g_ref[...], preferred_element_type=jnp.float32) + b1g_ref[...]
    hgl = (a * _gelu_tanh(g)).astype(jnp.bfloat16)
    ff = jnp.dot(hgl, w2_ref[...], preferred_element_type=jnp.float32) + b2_ref[...]
    out_ref[0] = (x + ff).astype(out_ref.dtype)


# ---------------------------------------------------------------------------
# One-time parameter preparation (do NOT redo this on every forward call)
# ---------------------------------------------------------------------------
def prepare_block_params(params, heads, d_head):
    """bf16-cast the MXU weights, split the fused GEGLU projection into
    value/gate halves and reshape to_out into head-major (heads, d_head, D)
    slabs.  Returns a tuple in the kernel's positional argument order."""
    ff_inner = params['w2'].shape[0]
    bf16 = lambda a: a.astype(jnp.bfloat16)
    wo1 = bf16(params['wo1']).reshape(heads, d_head, params['wo1'].shape[1])
    wo2 = bf16(params['wo2']).reshape(heads, d_head, params['wo2'].shape[1])
    return (
        params['ln1w'], params['ln1b'],
        bf16(params['wq1']), bf16(params['wk1']), bf16(params['wv1']),
        wo1, params['bo1'],
        params['ln2w'], params['ln2b'],
        bf16(params['wq2']), bf16(params['wk2']), bf16(params['wv2']),
        wo2, params['bo2'],
        params['ln3w'], params['ln3b'],
        bf16(params['w1'][:, :ff_inner]), params['b1'][:, :ff_inner],
        bf16(params['w1'][:, ff_inner:]), params['b1'][:, ff_inner:],
        bf16(params['w2']), params['b2'],
    )


def _pick_kv_chunk(kv_len, target=512):
    """Largest chunk <= target that divides kv_len (single chunk otherwise);
    bounds the online-softmax working set."""
    if kv_len <= target:
        return kv_len
    c = target
    while c > 8 and kv_len % c:
        c //= 2
    return c if kv_len % c == 0 else kv_len


def _spec(block_shape, index_map, single_buffered=False):
    """BlockSpec helper; grid-invariant operands are single-buffered
    (pl.Buffered(1)) so they don't hold 2x their size in VMEM."""
    if single_buffered:
        try:
            return pl.BlockSpec(block_shape, index_map,
                                pipeline_mode=pl.Buffered(1))
        except (TypeError, AttributeError):   # BlockSpec without pipeline_mode
            pass
    return pl.BlockSpec(block_shape, index_map)


# ---------------------------------------------------------------------------
# Wrapper: builds grid / BlockSpecs and calls pallas_call
# ---------------------------------------------------------------------------
def basic_transformer_block(x, context, prepped_weights, heads, d_head,
                            *, block_n=None, out_dtype=None):
    B, N, D = x.shape
    _, M, Dc = context.shape
    inner = heads * d_head
    out_dtype = out_dtype if out_dtype is not None else x.dtype

    # Generation-aware VMEM budget (v7x: 64 MiB/TC, v5e/v6e: 128 MiB) and
    # default query-tile size.
    try:
        vmem_cap = pltpu.get_tpu_info().vmem_capacity_bytes
    except Exception:
        vmem_cap = 128 * 1024 * 1024
    vmem_limit = min(48 * 1024 * 1024, (vmem_cap * 5) // 8)   # ~40 MiB on v7x
    if block_n is None:
        block_n = 512 if vmem_cap >= 96 * 1024 * 1024 else 256

    # Query-tile size: a multiple of 8 (sublane) that divides N, else whole N.
    tn = block_n if (N % block_n == 0 and block_n % 8 == 0) else N
    n_tiles = N // tn
    kv_chunk_self = _pick_kv_chunk(N)
    kv_chunk_cross = _pick_kv_chunk(M)

    weights = tuple(prepped_weights)
    weight_specs = [
        _spec(w.shape, lambda b, n, _nd=w.ndim: (0,) * _nd, single_buffered=True)
        for w in weights
    ]
    in_specs = [
        pl.BlockSpec((1, tn, D), lambda b, n: (b, n, 0)),             # query tile
        _spec((1, N, D), lambda b, n: (b, 0, 0), single_buffered=True),  # full pts (read once/batch)
        pl.BlockSpec((1, M, Dc), lambda b, n: (b, 0, 0)),             # context
    ] + weight_specs

    kernel = functools.partial(block_kernel, heads=heads, d_head=d_head,
                               kv_chunk_self=kv_chunk_self,
                               kv_chunk_cross=kv_chunk_cross)
    return pl.pallas_call(
        kernel,
        out_shape=jax.ShapeDtypeStruct((B, N, D), out_dtype),
        grid=(B, n_tiles),
        in_specs=in_specs,
        out_specs=pl.BlockSpec((1, tn, D), lambda b, n: (b, n, 0)),
        scratch_shapes=[
            pltpu.VMEM((N, inner), jnp.bfloat16),   # self-attn K cache (per batch)
            pltpu.VMEM((N, inner), jnp.bfloat16),   # self-attn V cache
            pltpu.VMEM((M, inner), jnp.bfloat16),   # cross-attn K cache
            pltpu.VMEM((M, inner), jnp.bfloat16),   # cross-attn V cache
        ],
        compiler_params=pltpu.CompilerParams(
            dimension_semantics=("parallel", "arbitrary"),
            vmem_limit_bytes=vmem_limit),
    )(x, x, context, *weights)


# ---------------------------------------------------------------------------
# Deterministic parameter construction (shapes follow the torch __init__)
# ---------------------------------------------------------------------------
def init_params(key, dim, heads, d_head, context_dim, ff_mult=4):
    inner = heads * d_head
    ff_inner = dim * ff_mult
    ks = jax.random.split(key, 10)

    def lin(k, fan_in, fan_out):
        return jax.random.normal(k, (fan_in, fan_out), jnp.float32) * (fan_in ** -0.5)

    return dict(
        ln1w=jnp.ones((1, dim), jnp.float32), ln1b=jnp.zeros((1, dim), jnp.float32),
        wq1=lin(ks[0], dim, inner), wk1=lin(ks[1], dim, inner), wv1=lin(ks[2], dim, inner),
        wo1=lin(ks[3], inner, dim), bo1=jnp.zeros((1, dim), jnp.float32),
        ln2w=jnp.ones((1, dim), jnp.float32), ln2b=jnp.zeros((1, dim), jnp.float32),
        wq2=lin(ks[4], dim, inner), wk2=lin(ks[5], context_dim, inner),
        wv2=lin(ks[6], context_dim, inner),
        wo2=lin(ks[7], inner, dim), bo2=jnp.zeros((1, dim), jnp.float32),
        ln3w=jnp.ones((1, dim), jnp.float32), ln3b=jnp.zeros((1, dim), jnp.float32),
        w1=lin(ks[8], dim, ff_inner * 2), b1=jnp.zeros((1, ff_inner * 2), jnp.float32),
        w2=lin(ks[9], ff_inner, dim), b2=jnp.zeros((1, dim), jnp.float32),
    )


if __name__ == "__main__":
    key = jax.random.PRNGKey(0)
    B, N, dim = 2, 16, 32          # 2 batches, 16 sparse points per batch, dim=32
    heads, d_head = 4, 8           # inner_dim = 32
    M, context_dim = 8, 16         # context sequence length 8, context_dim 16

    kx, kc, kp = jax.random.split(key, 3)
    x = jax.random.normal(kx, (B, N, dim), jnp.float32)
    context = jax.random.normal(kc, (B, M, context_dim), jnp.float32)
    params = init_params(kp, dim, heads, d_head, context_dim)
    prepped = prepare_block_params(params, heads, d_head)   # one-time weight prep

    # block_n=8 exercises the per-batch K/V cache across tiles: grid = (2, 2).
    out = basic_transformer_block(x, context, prepped, heads, d_head, block_n=8)
    jax.block_until_ready(out)
    assert out.shape == (B, N, dim)
    print("KERNEL_OK")
</pallas_src>

<mosaic_0001>
module attributes {stable_mosaic.version = 11 : i64} {
  func.func @block_kernel(%arg0: i32, %arg1: i32, %arg2: memref<1x8x32xf32, #tpu.memory_space<vmem>>, %arg3: memref<1x16x32xf32, #tpu.memory_space<vmem>>, %arg4: memref<1x8x16xf32, #tpu.memory_space<vmem>>, %arg5: memref<1x32xf32, #tpu.memory_space<vmem>>, %arg6: memref<1x32xf32, #tpu.memory_space<vmem>>, %arg7: memref<32x32xbf16, #tpu.memory_space<vmem>>, %arg8: memref<32x32xbf16, #tpu.memory_space<vmem>>, %arg9: memref<32x32xbf16, #tpu.memory_space<vmem>>, %arg10: memref<4x8x32xbf16, #tpu.memory_space<vmem>>, %arg11: memref<1x32xf32, #tpu.memory_space<vmem>>, %arg12: memref<1x32xf32, #tpu.memory_space<vmem>>, %arg13: memref<1x32xf32, #tpu.memory_space<vmem>>, %arg14: memref<32x32xbf16, #tpu.memory_space<vmem>>, %arg15: memref<16x32xbf16, #tpu.memory_space<vmem>>, %arg16: memref<16x32xbf16, #tpu.memory_space<vmem>>, %arg17: memref<4x8x32xbf16, #tpu.memory_space<vmem>>, %arg18: memref<1x32xf32, #tpu.memory_space<vmem>>, %arg19: memref<1x32xf32, #tpu.memory_space<vmem>>, %arg20: memref<1x32xf32, #tpu.memory_space<vmem>>, %arg21: memref<32x128xbf16, #tpu.memory_space<vmem>>, %arg22: memref<1x128xf32, #tpu.memory_space<vmem>>, %arg23: memref<32x128xbf16, #tpu.memory_space<vmem>>, %arg24: memref<1x128xf32, #tpu.memory_space<vmem>>, %arg25: memref<128x32xbf16, #tpu.memory_space<vmem>>, %arg26: memref<1x32xf32, #tpu.memory_space<vmem>>, %arg27: memref<1x8x32xf32, #tpu.memory_space<vmem>>, %arg28: memref<16x32xbf16, #tpu.memory_space<vmem>>, %arg29: memref<16x32xbf16, #tpu.memory_space<vmem>>, %arg30: memref<8x32xbf16, #tpu.memory_space<vmem>>, %arg31: memref<8x32xbf16, #tpu.memory_space<vmem>>) attributes {dimension_semantics = [#tpu.dimension_semantics<parallel>, #tpu.dimension_semantics<arbitrary>], iteration_bounds = array<i64: 2, 2>, scalar_prefetch = 0 : i64, scratch_operands = 4 : i64, tpu.core_type = #tpu.core_type<tc>, window_params = [{transform_indices = @transform_0, window_bounds = array<i64: 1, 8, 32>}, {pipeline_mode = #tpu.pipeline_mode<synchronous>, transform_indices = @transform_1, window_bounds = array<i64: 1, 16, 32>}, {transform_indices = @transform_2, window_bounds = array<i64: 1, 8, 16>}, {pipeline_mode = #tpu.pipeline_mode<synchronous>, transform_indices = @transform_3, window_bounds = array<i64: 1, 32>}, {pipeline_mode = #tpu.pipeline_mode<synchronous>, transform_indices = @transform_4, window_bounds = array<i64: 1, 32>}, {pipeline_mode = #tpu.pipeline_mode<synchronous>, transform_indices = @transform_5, window_bounds = array<i64: 32, 32>}, {pipeline_mode = #tpu.pipeline_mode<synchronous>, transform_indices = @transform_6, window_bounds = array<i64: 32, 32>}, {pipeline_mode = #tpu.pipeline_mode<synchronous>, transform_indices = @transform_7, window_bounds = array<i64: 32, 32>}, {pipeline_mode = #tpu.pipeline_mode<synchronous>, transform_indices = @transform_8, window_bounds = array<i64: 4, 8, 32>}, {pipeline_mode = #tpu.pipeline_mode<synchronous>, transform_indices = @transform_9, window_bounds = array<i64: 1, 32>}, {pipeline_mode = #tpu.pipeline_mode<synchronous>, transform_indices = @transform_10, window_bounds = array<i64: 1, 32>}, {pipeline_mode = #tpu.pipeline_mode<synchronous>, transform_indices = @transform_11, window_bounds = array<i64: 1, 32>}, {pipeline_mode = #tpu.pipeline_mode<synchronous>, transform_indices = @transform_12, window_bounds = array<i64: 32, 32>}, {pipeline_mode = #tpu.pipeline_mode<synchronous>, transform_indices = @transform_13, window_bounds = array<i64: 16, 32>}, {pipeline_mode = #tpu.pipeline_mode<synchronous>, transform_indices = @transform_14, window_bounds = array<i64: 16, 32>}, {pipeline_mode = #tpu.pipeline_mode<synchronous>, transform_indices = @transform_15, window_bounds = array<i64: 4, 8, 32>}, {pipeline_mode = #tpu.pipeline_mode<synchronous>, transform_indices = @transform_16, window_bounds = array<i64: 1, 32>}, {pipeline_mode = #tpu.pipeline_mode<synchronous>, transform_indices = @transform_17, window_bounds = array<i64: 1, 32>}, {pipeline_mode = #tpu.pipeline_mode<synchronous>, transform_indices = @transform_18, window_bounds = array<i64: 1, 32>}, {pipeline_mode = #tpu.pipeline_mode<synchronous>, transform_indices = @transform_19, window_bounds = array<i64: 32, 128>}, {pipeline_mode = #tpu.pipeline_mode<synchronous>, transform_indices = @transform_20, window_bounds = array<i64: 1, 128>}, {pipeline_mode = #tpu.pipeline_mode<synchronous>, transform_indices = @transform_21, window_bounds = array<i64: 32, 128>}, {pipeline_mode = #tpu.pipeline_mode<synchronous>, transform_indices = @transform_22, window_bounds = array<i64: 1, 128>}, {pipeline_mode = #tpu.pipeline_mode<synchronous>, transform_indices = @transform_23, window_bounds = array<i64: 128, 32>}, {pipeline_mode = #tpu.pipeline_mode<synchronous>, transform_indices = @transform_24, window_bounds = array<i64: 1, 32>}, {transform_indices = @transform_25, window_bounds = array<i64: 1, 8, 32>}]} {
    %c0_i32 = arith.constant 0 : i32
    %0 = arith.cmpi eq, %arg1, %c0_i32 : i32
    %1 = arith.extui %0 : i1 to i32
    %c0_i32_0 = arith.constant 0 : i32
    %2 = arith.cmpi ne, %1, %c0_i32_0 : i32
    scf.if %2 {
      %c0_155 = arith.constant 0 : index
      %c0_156 = arith.constant 0 : index
      %c0_157 = arith.constant 0 : index
      %302 = vector.load %arg3[%c0_155, %c0_156, %c0_157] : memref<1x16x32xf32, #tpu.memory_space<vmem>>, vector<1x16x32xf32>
      %303 = vector.shape_cast %302 : vector<1x16x32xf32> to vector<16x32xf32>
      %c0_158 = arith.constant 0 : index
      %c0_159 = arith.constant 0 : index
      %304 = vector.load %arg5[%c0_158, %c0_159] : memref<1x32xf32, #tpu.memory_space<vmem>>, vector<1x32xf32>
      %c0_160 = arith.constant 0 : index
      %c0_161 = arith.constant 0 : index
      %305 = vector.load %arg6[%c0_160, %c0_161] : memref<1x32xf32, #tpu.memory_space<vmem>>, vector<1x32xf32>
      %cst_162 = arith.constant dense<0.000000e+00> : vector<16xf32>
      %306 = vector.multi_reduction <add>, %303, %cst_162 [1] : vector<16x32xf32> to vector<16xf32>
      %307 = vector.shape_cast %306 : vector<16xf32> to vector<16x1xf32>
      %cst_163 = arith.constant 3.200000e+01 : f32
      %308 = vector.broadcast %cst_163 : f32 to vector<16x1xf32>
      %309 = arith.divf %307, %308 : vector<16x1xf32>
      %310 = vector.broadcast %309 : vector<16x1xf32> to vector<16x32xf32>
      %311 = arith.subf %303, %310 : vector<16x32xf32>
      %312 = arith.mulf %311, %311 : vector<16x32xf32>
      %cst_164 = arith.constant dense<0.000000e+00> : vector<16xf32>
      %313 = vector.multi_reduction <add>, %312, %cst_164 [1] : vector<16x32xf32> to vector<16xf32>
      %314 = vector.shape_cast %313 : vector<16xf32> to vector<16x1xf32>
      %cst_165 = arith.constant 3.200000e+01 : f32
      %315 = vector.broadcast %cst_165 : f32 to vector<16x1xf32>
      %316 = arith.divf %314, %315 : vector<16x1xf32>
      %317 = vector.broadcast %309 : vector<16x1xf32> to vector<16x32xf32>
      %318 = arith.subf %303, %317 : vector<16x32xf32>
      %cst_166 = arith.constant 9.99999974E-6 : f32
      %319 = vector.broadcast %cst_166 : f32 to vector<16x1xf32>
      %320 = arith.addf %316, %319 : vector<16x1xf32>
      %321 = math.rsqrt %320 : vector<16x1xf32>
      %322 = vector.broadcast %321 : vector<16x1xf32> to vector<16x32xf32>
      %323 = arith.mulf %318, %322 : vector<16x32xf32>
      %324 = vector.broadcast %304 : vector<1x32xf32> to vector<16x32xf32>
      %325 = arith.mulf %323, %324 : vector<16x32xf32>
      %326 = vector.broadcast %305 : vector<1x32xf32> to vector<16x32xf32>
      %327 = arith.addf %325, %326 : vector<16x32xf32>
      %328 = arith.truncf %327 : vector<16x32xf32> to vector<16x32xbf16>
      %c0_167 = arith.constant 0 : index
      %c0_168 = arith.constant 0 : index
      %329 = vector.load %arg8[%c0_167, %c0_168] : memref<32x32xbf16, #tpu.memory_space<vmem>>, vector<32x32xbf16>
      %cst_169 = arith.constant dense<0.000000e+00> : vector<16x32xf32>
      %330 = tpu.matmul %328, %329, %cst_169 {dimension_numbers = #tpu.dot_dimension_numbers<[1], [0], [0], [1], [0, 0, 1, 1], [], []>} : vector<16x32xbf16>, vector<32x32xbf16>, vector<16x32xf32> -> vector<16x32xf32>
      %331 = arith.truncf %330 : vector<16x32xf32> to vector<16x32xbf16>
      %c0_170 = arith.constant 0 : index
      %c0_171 = arith.constant 0 : index
      %332 = vector.load %arg28[%c0_170, %c0_171] : memref<16x32xbf16, #tpu.memory_space<vmem>>, vector<16x32xbf16>
      tpu.vector_store %arg28[%c0_170, %c0_171], %331 {strides = array<i32>} : memref<16x32xbf16, #tpu.memory_space<vmem>>, vector<16x32xbf16>,
      %c0_172 = arith.constant 0 : index
      %c0_173 = arith.constant 0 : index
      %333 = vector.load %arg9[%c0_172, %c0_173] : memref<32x32xbf16, #tpu.memory_space<vmem>>, vector<32x32xbf16>
      %cst_174 = arith.constant dense<0.000000e+00> : vector<16x32xf32>
      %334 = tpu.matmul %328, %333, %cst_174 {dimension_numbers = #tpu.dot_dimension_numbers<[1], [0], [0], [1], [0, 0, 1, 1], [], []>} : vector<16x32xbf16>, vector<32x32xbf16>, vector<16x32xf32> -> vector<16x32xf32>
      %335 = arith.truncf %334 : vector<16x32xf32> to vector<16x32xbf16>
      %c0_175 = arith.constant 0 : index
      %c0_176 = arith.constant 0 : index
      %336 = vector.load %arg29[%c0_175, %c0_176] : memref<16x32xbf16, #tpu.memory_space<vmem>>, vector<16x32xbf16>
      tpu.vector_store %arg29[%c0_175, %c0_176], %335 {strides = array<i32>} : memref<16x32xbf16, #tpu.memory_space<vmem>>, vector<16x32xbf16>,
      %c0_177 = arith.constant 0 : index
      %c0_178 = arith.constant 0 : index
      %c0_179 = arith.constant 0 : index
      %337 = vector.load %arg4[%c0_177, %c0_178, %c0_179] : memref<1x8x16xf32, #tpu.memory_space<vmem>>, vector<1x8x16xf32>
      %338 = vector.shape_cast %337 : vector<1x8x16xf32> to vector<8x16xf32>
      %339 = arith.truncf %338 : vector<8x16xf32> to vector<8x16xbf16>
      %c0_180 = arith.constant 0 : index
      %c0_181 = arith.constant 0 : index
      %340 = vector.load %arg15[%c0_180, %c0_181] : memref<16x32xbf16, #tpu.memory_space<vmem>>, vector<16x32xbf16>
      %cst_182 = arith.constant dense<0.000000e+00> : vector<8x32xf32>
      %341 = tpu.matmul %339, %340, %cst_182 {dimension_numbers = #tpu.dot_dimension_numbers<[1], [0], [0], [1], [0, 0, 1, 1], [], []>} : vector<8x16xbf16>, vector<16x32xbf16>, vector<8x32xf32> -> vector<8x32xf32>
      %342 = arith.truncf %341 : vector<8x32xf32> to vector<8x32xbf16>
      %c0_183 = arith.constant 0 : index
      %c0_184 = arith.constant 0 : index
      %343 = vector.load %arg30[%c0_183, %c0_184] : memref<8x32xbf16, #tpu.memory_space<vmem>>, vector<8x32xbf16>
      tpu.vector_store %arg30[%c0_183, %c0_184], %342 {strides = array<i32>} : memref<8x32xbf16, #tpu.memory_space<vmem>>, vector<8x32xbf16>,
      %c0_185 = arith.constant 0 : index
      %c0_186 = arith.constant 0 : index
      %344 = vector.load %arg16[%c0_185, %c0_186] : memref<16x32xbf16, #tpu.memory_space<vmem>>, vector<16x32xbf16>
      %cst_187 = arith.constant dense<0.000000e+00> : vector<8x32xf32>
      %345 = tpu.matmul %339, %344, %cst_187 {dimension_numbers = #tpu.dot_dimension_numbers<[1], [0], [0], [1], [0, 0, 1, 1], [], []>} : vector<8x16xbf16>, vector<16x32xbf16>, vector<8x32xf32> -> vector<8x32xf32>
      %346 = arith.truncf %345 : vector<8x32xf32> to vector<8x32xbf16>
      %c0_188 = arith.constant 0 : index
      %c0_189 = arith.constant 0 : index
      %347 = vector.load %arg31[%c0_188, %c0_189] : memref<8x32xbf16, #tpu.memory_space<vmem>>, vector<8x32xbf16>
      tpu.vector_store %arg31[%c0_188, %c0_189], %346 {strides = array<i32>} : memref<8x32xbf16, #tpu.memory_space<vmem>>, vector<8x32xbf16>,
    } else {
    }
    %c0 = arith.constant 0 : index
    %c0_1 = arith.constant 0 : index
    %c0_2 = arith.constant 0 : index
    %3 = vector.load %arg2[%c0, %c0_1, %c0_2] : memref<1x8x32xf32, #tpu.memory_space<vmem>>, vector<1x8x32xf32>
    %4 = vector.shape_cast %3 : vector<1x8x32xf32> to vector<8x32xf32>
    %c0_3 = arith.constant 0 : index
    %c0_4 = arith.constant 0 : index
    %5 = vector.load %arg5[%c0_3, %c0_4] : memref<1x32xf32, #tpu.memory_space<vmem>>, vector<1x32xf32>
    %c0_5 = arith.constant 0 : index
    %c0_6 = arith.constant 0 : index
    %6 = vector.load %arg6[%c0_5, %c0_6] : memref<1x32xf32, #tpu.memory_space<vmem>>, vector<1x32xf32>
    %cst = arith.constant dense<0.000000e+00> : vector<8xf32>
    %7 = vector.multi_reduction <add>, %4, %cst [1] : vector<8x32xf32> to vector<8xf32>
    %8 = vector.shape_cast %7 : vector<8xf32> to vector<8x1xf32>
    %cst_7 = arith.constant 3.200000e+01 : f32
    %9 = vector.broadcast %cst_7 : f32 to vector<8x1xf32>
    %10 = arith.divf %8, %9 : vector<8x1xf32>
    %11 = vector.broadcast %10 : vector<8x1xf32> to vector<8x32xf32>
    %12 = arith.subf %4, %11 : vector<8x32xf32>
    %13 = arith.mulf %12, %12 : vector<8x32xf32>
    %cst_8 = arith.constant dense<0.000000e+00> : vector<8xf32>
    %14 = vector.multi_reduction <add>, %13, %cst_8 [1] : vector<8x32xf32> to vector<8xf32>
    %15 = vector.shape_cast %14 : vector<8xf32> to vector<8x1xf32>
    %cst_9 = arith.constant 3.200000e+01 : f32
    %16 = vector.broadcast %cst_9 : f32 to vector<8x1xf32>
    %17 = arith.divf %15, %16 : vector<8x1xf32>
    %18 = vector.broadcast %10 : vector<8x1xf32> to vector<8x32xf32>
    %19 = arith.subf %4, %18 : vector<8x32xf32>
    %cst_10 = arith.constant 9.99999974E-6 : f32
    %20 = vector.broadcast %cst_10 : f32 to vector<8x1xf32>
    %21 = arith.addf %17, %20 : vector<8x1xf32>
    %22 = math.rsqrt %21 : vector<8x1xf32>
    %23 = vector.broadcast %22 : vector<8x1xf32> to vector<8x32xf32>
    %24 = arith.mulf %19, %23 : vector<8x32xf32>
    %25 = vector.broadcast %5 : vector<1x32xf32> to vector<8x32xf32>
    %26 = arith.mulf %24, %25 : vector<8x32xf32>
    %27 = vector.broadcast %6 : vector<1x32xf32> to vector<8x32xf32>
    %28 = arith.addf %26, %27 : vector<8x32xf32>
    %29 = arith.truncf %28 : vector<8x32xf32> to vector<8x32xbf16>
    %c0_11 = arith.constant 0 : index
    %c0_12 = arith.constant 0 : index
    %30 = vector.load %arg7[%c0_11, %c0_12] : memref<32x32xbf16, #tpu.memory_space<vmem>>, vector<32x32xbf16>
    %cst_13 = arith.constant dense<0.000000e+00> : vector<8x32xf32>
    %31 = tpu.matmul %29, %30, %cst_13 {dimension_numbers = #tpu.dot_dimension_numbers<[1], [0], [0], [1], [0, 0, 1, 1], [], []>} : vector<8x32xbf16>, vector<32x32xbf16>, vector<8x32xf32> -> vector<8x32xf32>
    %c0_14 = arith.constant 0 : index
    %c0_15 = arith.constant 0 : index
    %32 = vector.load %arg11[%c0_14, %c0_15] : memref<1x32xf32, #tpu.memory_space<vmem>>, vector<1x32xf32>
    %cst_16 = arith.constant 0.353553385 : f32
    %33 = vector.broadcast %cst_16 : f32 to vector<8x32xf32>
    %34 = arith.mulf %31, %33 : vector<8x32xf32>
    %35 = arith.truncf %34 : vector<8x32xf32> to vector<8x32xbf16>
    %cst_17 = arith.constant 0.000000e+00 : f32
    %36 = vector.broadcast %cst_17 : f32 to vector<8x32xf32>
    %37 = vector.extract_strided_slice %35 {offsets = [0, 0], sizes = [8, 8], strides = [1, 1]} : vector<8x32xbf16> to vector<8x8xbf16>
    %c0_18 = arith.constant 0 : index
    %c0_19 = arith.constant 0 : index
    %38 = vector.load %arg28[%c0_18, %c0_19] : memref<16x32xbf16, #tpu.memory_space<vmem>>, vector<16x8xbf16>
    %c0_20 = arith.constant 0 : index
    %c0_21 = arith.constant 0 : index
    %39 = vector.load %arg29[%c0_20, %c0_21] : memref<16x32xbf16, #tpu.memory_space<vmem>>, vector<16x8xbf16>
    %cst_22 = arith.constant dense<0.000000e+00> : vector<8x16xf32>
    %40 = tpu.matmul %37, %38, %cst_22 {dimension_numbers = #tpu.dot_dimension_numbers<[1], [1], [0], [0], [0, 0, 1, 0], [], []>} : vector<8x8xbf16>, vector<16x8xbf16>, vector<8x16xf32> -> vector<8x16xf32>
    %cst_23 = arith.constant dense<0xFF800000> : vector<8xf32>
    %41 = vector.multi_reduction <maximumf>, %40, %cst_23 [1] : vector<8x16xf32> to vector<8xf32>
    %42 = vector.shape_cast %41 : vector<8xf32> to vector<8x1xf32>
    %43 = vector.broadcast %42 : vector<8x1xf32> to vector<8x16xf32>
    %44 = arith.subf %40, %43 : vector<8x16xf32>
    %45 = math.exp %44 : vector<8x16xf32>
    %cst_24 = arith.constant dense<0.000000e+00> : vector<8xf32>
    %46 = vector.multi_reduction <add>, %45, %cst_24 [1] : vector<8x16xf32> to vector<8xf32>
    %47 = vector.shape_cast %46 : vector<8xf32> to vector<8x1xf32>
    %48 = arith.truncf %45 : vector<8x16xf32> to vector<8x16xbf16>
    %cst_25 = arith.constant dense<0.000000e+00> : vector<8x8xf32>
    %49 = tpu.matmul %48, %39, %cst_25 {dimension_numbers = #tpu.dot_dimension_numbers<[1], [0], [0], [1], [0, 0, 1, 1], [], []>} : vector<8x16xbf16>, vector<16x8xbf16>, vector<8x8xf32> -> vector<8x8xf32>
    %50 = tpu.reciprocal %47 {approx = true} : vector<8x1xf32> -> vector<8x1xf32>
    %51 = vector.broadcast %50 : vector<8x1xf32> to vector<8x8xf32>
    %52 = arith.mulf %49, %51 : vector<8x8xf32>
    %53 = arith.truncf %52 : vector<8x8xf32> to vector<8x8xbf16>
    %c0_26 = arith.constant 0 : index
    %c0_27 = arith.constant 0 : index
    %c0_28 = arith.constant 0 : index
    %54 = vector.load %arg10[%c0_26, %c0_27, %c0_28] : memref<4x8x32xbf16, #tpu.memory_space<vmem>>, vector<1x8x32xbf16>
    %55 = vector.shape_cast %54 : vector<1x8x32xbf16> to vector<8x32xbf16>
    %cst_29 = arith.constant dense<0.000000e+00> : vector<8x32xf32>
    %56 = tpu.matmul %53, %55, %cst_29 {dimension_numbers = #tpu.dot_dimension_numbers<[1], [0], [0], [1], [0, 0, 1, 1], [], []>} : vector<8x8xbf16>, vector<8x32xbf16>, vector<8x32xf32> -> vector<8x32xf32>
    %57 = arith.addf %36, %56 : vector<8x32xf32>
    %58 = vector.extract_strided_slice %35 {offsets = [0, 8], sizes = [8, 8], strides = [1, 1]} : vector<8x32xbf16> to vector<8x8xbf16>
    %c0_30 = arith.constant 0 : index
    %c8 = arith.constant 8 : index
    %59 = vector.load %arg28[%c0_30, %c8] : memref<16x32xbf16, #tpu.memory_space<vmem>>, vector<16x8xbf16>
    %c0_31 = arith.constant 0 : index
    %c8_32 = arith.constant 8 : index
    %60 = vector.load %arg29[%c0_31, %c8_32] : memref<16x32xbf16, #tpu.memory_space<vmem>>, vector<16x8xbf16>
    %cst_33 = arith.constant dense<0.000000e+00> : vector<8x16xf32>
    %61 = tpu.matmul %58, %59, %cst_33 {dimension_numbers = #tpu.dot_dimension_numbers<[1], [1], [0], [0], [0, 0, 1, 0], [], []>} : vector<8x8xbf16>, vector<16x8xbf16>, vector<8x16xf32> -> vector<8x16xf32>
    %cst_34 = arith.constant dense<0xFF800000> : vector<8xf32>
    %62 = vector.multi_reduction <maximumf>, %61, %cst_34 [1] : vector<8x16xf32> to vector<8xf32>
    %63 = vector.shape_cast %62 : vector<8xf32> to vector<8x1xf32>
    %64 = vector.broadcast %63 : vector<8x1xf32> to vector<8x16xf32>
    %65 = arith.subf %61, %64 : vector<8x16xf32>
    %66 = math.exp %65 : vector<8x16xf32>
    %cst_35 = arith.constant dense<0.000000e+00> : vector<8xf32>
    %67 = vector.multi_reduction <add>, %66, %cst_35 [1] : vector<8x16xf32> to vector<8xf32>
    %68 = vector.shape_cast %67 : vector<8xf32> to vector<8x1xf32>
    %69 = arith.truncf %66 : vector<8x16xf32> to vector<8x16xbf16>
    %cst_36 = arith.constant dense<0.000000e+00> : vector<8x8xf32>
    %70 = tpu.matmul %69, %60, %cst_36 {dimension_numbers = #tpu.dot_dimension_numbers<[1], [0], [0], [1], [0, 0, 1, 1], [], []>} : vector<8x16xbf16>, vector<16x8xbf16>, vector<8x8xf32> -> vector<8x8xf32>
    %71 = tpu.reciprocal %68 {approx = true} : vector<8x1xf32> -> vector<8x1xf32>
    %72 = vector.broadcast %71 : vector<8x1xf32> to vector<8x8xf32>
    %73 = arith.mulf %70, %72 : vector<8x8xf32>
    %74 = arith.truncf %73 : vector<8x8xf32> to vector<8x8xbf16>
    %c1 = arith.constant 1 : index
    %c0_37 = arith.constant 0 : index
    %c0_38 = arith.constant 0 : index
    %75 = vector.load %arg10[%c1, %c0_37, %c0_38] : memref<4x8x32xbf16, #tpu.memory_space<vmem>>, vector<1x8x32xbf16>
    %76 = vector.shape_cast %75 : vector<1x8x32xbf16> to vector<8x32xbf16>
    %cst_39 = arith.constant dense<0.000000e+00> : vector<8x32xf32>
    %77 = tpu.matmul %74, %76, %cst_39 {dimension_numbers = #tpu.dot_dimension_numbers<[1], [0], [0], [1], [0, 0, 1, 1], [], []>} : vector<8x8xbf16>, vector<8x32xbf16>, vector<8x32xf32> -> vector<8x32xf32>
    %78 = arith.addf %57, %77 : vector<8x32xf32>
    %79 = vector.extract_strided_slice %35 {offsets = [0, 16], sizes = [8, 8], strides = [1, 1]} : vector<8x32xbf16> to vector<8x8xbf16>
    %c0_40 = arith.constant 0 : index
    %c16 = arith.constant 16 : index
    %80 = vector.load %arg28[%c0_40, %c16] : memref<16x32xbf16, #tpu.memory_space<vmem>>, vector<16x8xbf16>
    %c0_41 = arith.constant 0 : index
    %c16_42 = arith.constant 16 : index
    %81 = vector.load %arg29[%c0_41, %c16_42] : memref<16x32xbf16, #tpu.memory_space<vmem>>, vector<16x8xbf16>
    %cst_43 = arith.constant dense<0.000000e+00> : vector<8x16xf32>
    %82 = tpu.matmul %79, %80, %cst_43 {dimension_numbers = #tpu.dot_dimension_numbers<[1], [1], [0], [0], [0, 0, 1, 0], [], []>} : vector<8x8xbf16>, vector<16x8xbf16>, vector<8x16xf32> -> vector<8x16xf32>
    %cst_44 = arith.constant dense<0xFF800000> : vector<8xf32>
    %83 = vector.multi_reduction <maximumf>, %82, %cst_44 [1] : vector<8x16xf32> to vector<8xf32>
    %84 = vector.shape_cast %83 : vector<8xf32> to vector<8x1xf32>
    %85 = vector.broadcast %84 : vector<8x1xf32> to vector<8x16xf32>
    %86 = arith.subf %82, %85 : vector<8x16xf32>
    %87 = math.exp %86 : vector<8x16xf32>
    %cst_45 = arith.constant dense<0.000000e+00> : vector<8xf32>
    %88 = vector.multi_reduction <add>, %87, %cst_45 [1] : vector<8x16xf32> to vector<8xf32>
    %89 = vector.shape_cast %88 : vector<8xf32> to vector<8x1xf32>
    %90 = arith.truncf %87 : vector<8x16xf32> to vector<8x16xbf16>
    %cst_46 = arith.constant dense<0.000000e+00> : vector<8x8xf32>
    %91 = tpu.matmul %90, %81, %cst_46 {dimension_numbers = #tpu.dot_dimension_numbers<[1], [0], [0], [1], [0, 0, 1, 1], [], []>} : vector<8x16xbf16>, vector<16x8xbf16>, vector<8x8xf32> -> vector<8x8xf32>
    %92 = tpu.reciprocal %89 {approx = true} : vector<8x1xf32> -> vector<8x1xf32>
    %93 = vector.broadcast %92 : vector<8x1xf32> to vector<8x8xf32>
    %94 = arith.mulf %91, %93 : vector<8x8xf32>
    %95 = arith.truncf %94 : vector<8x8xf32> to vector<8x8xbf16>
    %c2 = arith.constant 2 : index
    %c0_47 = arith.constant 0 : index
    %c0_48 = arith.constant 0 : index
    %96 = vector.load %arg10[%c2, %c0_47, %c0_48] : memref<4x8x32xbf16, #tpu.memory_space<vmem>>, vector<1x8x32xbf16>
    %97 = vector.shape_cast %96 : vector<1x8x32xbf16> to vector<8x32xbf16>
    %cst_49 = arith.constant dense<0.000000e+00> : vector<8x32xf32>
    %98 = tpu.matmul %95, %97, %cst_49 {dimension_numbers = #tpu.dot_dimension_numbers<[1], [0], [0], [1], [0, 0, 1, 1], [], []>} : vector<8x8xbf16>, vector<8x32xbf16>, vector<8x32xf32> -> vector<8x32xf32>
    %99 = arith.addf %78, %98 : vector<8x32xf32>
    %100 = vector.extract_strided_slice %35 {offsets = [0, 24], sizes = [8, 8], strides = [1, 1]} : vector<8x32xbf16> to vector<8x8xbf16>
    %c0_50 = arith.constant 0 : index
    %c24 = arith.constant 24 : index
    %101 = vector.load %arg28[%c0_50, %c24] : memref<16x32xbf16, #tpu.memory_space<vmem>>, vector<16x8xbf16>
    %c0_51 = arith.constant 0 : index
    %c24_52 = arith.constant 24 : index
    %102 = vector.load %arg29[%c0_51, %c24_52] : memref<16x32xbf16, #tpu.memory_space<vmem>>, vector<16x8xbf16>
    %cst_53 = arith.constant dense<0.000000e+00> : vector<8x16xf32>
    %103 = tpu.matmul %100, %101, %cst_53 {dimension_numbers = #tpu.dot_dimension_numbers<[1], [1], [0], [0], [0, 0, 1, 0], [], []>} : vector<8x8xbf16>, vector<16x8xbf16>, vector<8x16xf32> -> vector<8x16xf32>
    %cst_54 = arith.constant dense<0xFF800000> : vector<8xf32>
    %104 = vector.multi_reduction <maximumf>, %103, %cst_54 [1] : vector<8x16xf32> to vector<8xf32>
    %105 = vector.shape_cast %104 : vector<8xf32> to vector<8x1xf32>
    %106 = vector.broadcast %105 : vector<8x1xf32> to vector<8x16xf32>
    %107 = arith.subf %103, %106 : vector<8x16xf32>
    %108 = math.exp %107 : vector<8x16xf32>
    %cst_55 = arith.constant dense<0.000000e+00> : vector<8xf32>
    %109 = vector.multi_reduction <add>, %108, %cst_55 [1] : vector<8x16xf32> to vector<8xf32>
    %110 = vector.shape_cast %109 : vector<8xf32> to vector<8x1xf32>
    %111 = arith.truncf %108 : vector<8x16xf32> to vector<8x16xbf16>
    %cst_56 = arith.constant dense<0.000000e+00> : vector<8x8xf32>
    %112 = tpu.matmul %111, %102, %cst_56 {dimension_numbers = #tpu.dot_dimension_numbers<[1], [0], [0], [1], [0, 0, 1, 1], [], []>} : vector<8x16xbf16>, vector<16x8xbf16>, vector<8x8xf32> -> vector<8x8xf32>
    %113 = tpu.reciprocal %110 {approx = true} : vector<8x1xf32> -> vector<8x1xf32>
    %114 = vector.broadcast %113 : vector<8x1xf32> to vector<8x8xf32>
    %115 = arith.mulf %112, %114 : vector<8x8xf32>
    %116 = arith.truncf %115 : vector<8x8xf32> to vector<8x8xbf16>
    %c3 = arith.constant 3 : index
    %c0_57 = arith.constant 0 : index
    %c0_58 = arith.constant 0 : index
    %117 = vector.load %arg10[%c3, %c0_57, %c0_58] : memref<4x8x32xbf16, #tpu.memory_space<vmem>>, vector<1x8x32xbf16>
    %118 = vector.shape_cast %117 : vector<1x8x32xbf16> to vector<8x32xbf16>
    %cst_59 = arith.constant dense<0.000000e+00> : vector<8x32xf32>
    %119 = tpu.matmul %116, %118, %cst_59 {dimension_numbers = #tpu.dot_dimension_numbers<[1], [0], [0], [1], [0, 0, 1, 1], [], []>} : vector<8x8xbf16>, vector<8x32xbf16>, vector<8x32xf32> -> vector<8x32xf32>
    %120 = arith.addf %99, %119 : vector<8x32xf32>
    %121 = vector.broadcast %32 : vector<1x32xf32> to vector<8x32xf32>
    %122 = arith.addf %120, %121 : vector<8x32xf32>
    %123 = arith.addf %4, %122 : vector<8x32xf32>
    %c0_60 = arith.constant 0 : index
    %c0_61 = arith.constant 0 : index
    %124 = vector.load %arg12[%c0_60, %c0_61] : memref<1x32xf32, #tpu.memory_space<vmem>>, vector<1x32xf32>
    %c0_62 = arith.constant 0 : index
    %c0_63 = arith.constant 0 : index
    %125 = vector.load %arg13[%c0_62, %c0_63] : memref<1x32xf32, #tpu.memory_space<vmem>>, vector<1x32xf32>
    %cst_64 = arith.constant dense<0.000000e+00> : vector<8xf32>
    %126 = vector.multi_reduction <add>, %123, %cst_64 [1] : vector<8x32xf32> to vector<8xf32>
    %127 = vector.shape_cast %126 : vector<8xf32> to vector<8x1xf32>
    %cst_65 = arith.constant 3.200000e+01 : f32
    %128 = vector.broadcast %cst_65 : f32 to vector<8x1xf32>
    %129 = arith.divf %127, %128 : vector<8x1xf32>
    %130 = vector.broadcast %129 : vector<8x1xf32> to vector<8x32xf32>
    %131 = arith.subf %123, %130 : vector<8x32xf32>
    %132 = arith.mulf %131, %131 : vector<8x32xf32>
    %cst_66 = arith.constant dense<0.000000e+00> : vector<8xf32>
    %133 = vector.multi_reduction <add>, %132, %cst_66 [1] : vector<8x32xf32> to vector<8xf32>
    %134 = vector.shape_cast %133 : vector<8xf32> to vector<8x1xf32>
    %cst_67 = arith.constant 3.200000e+01 : f32
    %135 = vector.broadcast %cst_67 : f32 to vector<8x1xf32>
    %136 = arith.divf %134, %135 : vector<8x1xf32>
    %137 = vector.broadcast %129 : vector<8x1xf32> to vector<8x32xf32>
    %138 = arith.subf %123, %137 : vector<8x32xf32>
    %cst_68 = arith.constant 9.99999974E-6 : f32
    %139 = vector.broadcast %cst_68 : f32 to vector<8x1xf32>
    %140 = arith.addf %136, %139 : vector<8x1xf32>
    %141 = math.rsqrt %140 : vector<8x1xf32>
    %142 = vector.broadcast %141 : vector<8x1xf32> to vector<8x32xf32>
    %143 = arith.mulf %138, %142 : vector<8x32xf32>
    %144 = vector.broadcast %124 : vector<1x32xf32> to vector<8x32xf32>
    %145 = arith.mulf %143, %144 : vector<8x32xf32>
    %146 = vector.broadcast %125 : vector<1x32xf32> to vector<8x32xf32>
    %147 = arith.addf %145, %146 : vector<8x32xf32>
    %148 = arith.truncf %147 : vector<8x32xf32> to vector<8x32xbf16>
    %c0_69 = arith.constant 0 : index
    %c0_70 = arith.constant 0 : index
    %149 = vector.load %arg14[%c0_69, %c0_70] : memref<32x32xbf16, #tpu.memory_space<vmem>>, vector<32x32xbf16>
    %cst_71 = arith.constant dense<0.000000e+00> : vector<8x32xf32>
    %150 = tpu.matmul %148, %149, %cst_71 {dimension_numbers = #tpu.dot_dimension_numbers<[1], [0], [0], [1], [0, 0, 1, 1], [], []>} : vector<8x32xbf16>, vector<32x32xbf16>, vector<8x32xf32> -> vector<8x32xf32>
    %c0_72 = arith.constant 0 : index
    %c0_73 = arith.constant 0 : index
    %151 = vector.load %arg18[%c0_72, %c0_73] : memref<1x32xf32, #tpu.memory_space<vmem>>, vector<1x32xf32>
    %cst_74 = arith.constant 0.353553385 : f32
    %152 = vector.broadcast %cst_74 : f32 to vector<8x32xf32>
    %153 = arith.mulf %150, %152 : vector<8x32xf32>
    %154 = arith.truncf %153 : vector<8x32xf32> to vector<8x32xbf16>
    %cst_75 = arith.constant 0.000000e+00 : f32
    %155 = vector.broadcast %cst_75 : f32 to vector<8x32xf32>
    %156 = vector.extract_strided_slice %154 {offsets = [0, 0], sizes = [8, 8], strides = [1, 1]} : vector<8x32xbf16> to vector<8x8xbf16>
    %c0_76 = arith.constant 0 : index
    %c0_77 = arith.constant 0 : index
    %157 = vector.load %arg30[%c0_76, %c0_77] : memref<8x32xbf16, #tpu.memory_space<vmem>>, vector<8x8xbf16>
    %c0_78 = arith.constant 0 : index
    %c0_79 = arith.constant 0 : index
    %158 = vector.load %arg31[%c0_78, %c0_79] : memref<8x32xbf16, #tpu.memory_space<vmem>>, vector<8x8xbf16>
    %cst_80 = arith.constant dense<0.000000e+00> : vector<8x8xf32>
    %159 = tpu.matmul %156, %157, %cst_80 {dimension_numbers = #tpu.dot_dimension_numbers<[1], [1], [0], [0], [0, 0, 1, 0], [], []>} : vector<8x8xbf16>, vector<8x8xbf16>, vector<8x8xf32> -> vector<8x8xf32>
    %cst_81 = arith.constant dense<0xFF800000> : vector<8xf32>
    %160 = vector.multi_reduction <maximumf>, %159, %cst_81 [1] : vector<8x8xf32> to vector<8xf32>
    %161 = vector.shape_cast %160 : vector<8xf32> to vector<8x1xf32>
    %162 = vector.broadcast %161 : vector<8x1xf32> to vector<8x8xf32>
    %163 = arith.subf %159, %162 : vector<8x8xf32>
    %164 = math.exp %163 : vector<8x8xf32>
    %cst_82 = arith.constant dense<0.000000e+00> : vector<8xf32>
    %165 = vector.multi_reduction <add>, %164, %cst_82 [1] : vector<8x8xf32> to vector<8xf32>
    %166 = vector.shape_cast %165 : vector<8xf32> to vector<8x1xf32>
    %167 = arith.truncf %164 : vector<8x8xf32> to vector<8x8xbf16>
    %cst_83 = arith.constant dense<0.000000e+00> : vector<8x8xf32>
    %168 = tpu.matmul %167, %158, %cst_83 {dimension_numbers = #tpu.dot_dimension_numbers<[1], [0], [0], [1], [0, 0, 1, 1], [], []>} : vector<8x8xbf16>, vector<8x8xbf16>, vector<8x8xf32> -> vector<8x8xf32>
    %169 = tpu.reciprocal %166 {approx = true} : vector<8x1xf32> -> vector<8x1xf32>
    %170 = vector.broadcast %169 : vector<8x1xf32> to vector<8x8xf32>
    %171 = arith.mulf %168, %170 : vector<8x8xf32>
    %172 = arith.truncf %171 : vector<8x8xf32> to vector<8x8xbf16>
    %c0_84 = arith.constant 0 : index
    %c0_85 = arith.constant 0 : index
    %c0_86 = arith.constant 0 : index
    %173 = vector.load %arg17[%c0_84, %c0_85, %c0_86] : memref<4x8x32xbf16, #tpu.memory_space<vmem>>, vector<1x8x32xbf16>
    %174 = vector.shape_cast %173 : vector<1x8x32xbf16> to vector<8x32xbf16>
    %cst_87 = arith.constant dense<0.000000e+00> : vector<8x32xf32>
    %175 = tpu.matmul %172, %174, %cst_87 {dimension_numbers = #tpu.dot_dimension_numbers<[1], [0], [0], [1], [0, 0, 1, 1], [], []>} : vector<8x8xbf16>, vector<8x32xbf16>, vector<8x32xf32> -> vector<8x32xf32>
    %176 = arith.addf %155, %175 : vector<8x32xf32>
    %177 = vector.extract_strided_slice %154 {offsets = [0, 8], sizes = [8, 8], strides = [1, 1]} : vector<8x32xbf16> to vector<8x8xbf16>
    %c0_88 = arith.constant 0 : index
    %c8_89 = arith.constant 8 : index
    %178 = vector.load %arg30[%c0_88, %c8_89] : memref<8x32xbf16, #tpu.memory_space<vmem>>, vector<8x8xbf16>
    %c0_90 = arith.constant 0 : index
    %c8_91 = arith.constant 8 : index
    %179 = vector.load %arg31[%c0_90, %c8_91] : memref<8x32xbf16, #tpu.memory_space<vmem>>, vector<8x8xbf16>
    %cst_92 = arith.constant dense<0.000000e+00> : vector<8x8xf32>
    %180 = tpu.matmul %177, %178, %cst_92 {dimension_numbers = #tpu.dot_dimension_numbers<[1], [1], [0], [0], [0, 0, 1, 0], [], []>} : vector<8x8xbf16>, vector<8x8xbf16>, vector<8x8xf32> -> vector<8x8xf32>
    %cst_93 = arith.constant dense<0xFF800000> : vector<8xf32>
    %181 = vector.multi_reduction <maximumf>, %180, %cst_93 [1] : vector<8x8xf32> to vector<8xf32>
    %182 = vector.shape_cast %181 : vector<8xf32> to vector<8x1xf32>
    %183 = vector.broadcast %182 : vector<8x1xf32> to vector<8x8xf32>
    %184 = arith.subf %180, %183 : vector<8x8xf32>
    %185 = math.exp %184 : vector<8x8xf32>
    %cst_94 = arith.constant dense<0.000000e+00> : vector<8xf32>
    %186 = vector.multi_reduction <add>, %185, %cst_94 [1] : vector<8x8xf32> to vector<8xf32>
    %187 = vector.shape_cast %186 : vector<8xf32> to vector<8x1xf32>
    %188 = arith.truncf %185 : vector<8x8xf32> to vector<8x8xbf16>
    %cst_95 = arith.constant dense<0.000000e+00> : vector<8x8xf32>
    %189 = tpu.matmul %188, %179, %cst_95 {dimension_numbers = #tpu.dot_dimension_numbers<[1], [0], [0], [1], [0, 0, 1, 1], [], []>} : vector<8x8xbf16>, vector<8x8xbf16>, vector<8x8xf32> -> vector<8x8xf32>
    %190 = tpu.reciprocal %187 {approx = true} : vector<8x1xf32> -> vector<8x1xf32>
    %191 = vector.broadcast %190 : vector<8x1xf32> to vector<8x8xf32>
    %192 = arith.mulf %189, %191 : vector<8x8xf32>
    %193 = arith.truncf %192 : vector<8x8xf32> to vector<8x8xbf16>
    %c1_96 = arith.constant 1 : index
    %c0_97 = arith.constant 0 : index
    %c0_98 = arith.constant 0 : index
    %194 = vector.load %arg17[%c1_96, %c0_97, %c0_98] : memref<4x8x32xbf16, #tpu.memory_space<vmem>>, vector<1x8x32xbf16>
    %195 = vector.shape_cast %194 : vector<1x8x32xbf16> to vector<8x32xbf16>
    %cst_99 = arith.constant dense<0.000000e+00> : vector<8x32xf32>
    %196 = tpu.matmul %193, %195, %cst_99 {dimension_numbers = #tpu.dot_dimension_numbers<[1], [0], [0], [1], [0, 0, 1, 1], [], []>} : vector<8x8xbf16>, vector<8x32xbf16>, vector<8x32xf32> -> vector<8x32xf32>
    %197 = arith.addf %176, %196 : vector<8x32xf32>
    %198 = vector.extract_strided_slice %154 {offsets = [0, 16], sizes = [8, 8], strides = [1, 1]} : vector<8x32xbf16> to vector<8x8xbf16>
    %c0_100 = arith.constant 0 : index
    %c16_101 = arith.constant 16 : index
    %199 = vector.load %arg30[%c0_100, %c16_101] : memref<8x32xbf16, #tpu.memory_space<vmem>>, vector<8x8xbf16>
    %c0_102 = arith.constant 0 : index
    %c16_103 = arith.constant 16 : index
    %200 = vector.load %arg31[%c0_102, %c16_103] : memref<8x32xbf16, #tpu.memory_space<vmem>>, vector<8x8xbf16>
    %cst_104 = arith.constant dense<0.000000e+00> : vector<8x8xf32>
    %201 = tpu.matmul %198, %199, %cst_104 {dimension_numbers = #tpu.dot_dimension_numbers<[1], [1], [0], [0], [0, 0, 1, 0], [], []>} : vector<8x8xbf16>, vector<8x8xbf16>, vector<8x8xf32> -> vector<8x8xf32>
    %cst_105 = arith.constant dense<0xFF800000> : vector<8xf32>
    %202 = vector.multi_reduction <maximumf>, %201, %cst_105 [1] : vector<8x8xf32> to vector<8xf32>
    %203 = vector.shape_cast %202 : vector<8xf32> to vector<8x1xf32>
    %204 = vector.broadcast %203 : vector<8x1xf32> to vector<8x8xf32>
    %205 = arith.subf %201, %204 : vector<8x8xf32>
    %206 = math.exp %205 : vector<8x8xf32>
    %cst_106 = arith.constant dense<0.000000e+00> : vector<8xf32>
    %207 = vector.multi_reduction <add>, %206, %cst_106 [1] : vector<8x8xf32> to vector<8xf32>
    %208 = vector.shape_cast %207 : vector<8xf32> to vector<8x1xf32>
    %209 = arith.truncf %206 : vector<8x8xf32> to vector<8x8xbf16>
    %cst_107 = arith.constant dense<0.000000e+00> : vector<8x8xf32>
    %210 = tpu.matmul %209, %200, %cst_107 {dimension_numbers = #tpu.dot_dimension_numbers<[1], [0], [0], [1], [0, 0, 1, 1], [], []>} : vector<8x8xbf16>, vector<8x8xbf16>, vector<8x8xf32> -> vector<8x8xf32>
    %211 = tpu.reciprocal %208 {approx = true} : vector<8x1xf32> -> vector<8x1xf32>
    %212 = vector.broadcast %211 : vector<8x1xf32> to vector<8x8xf32>
    %213 = arith.mulf %210, %212 : vector<8x8xf32>
    %214 = arith.truncf %213 : vector<8x8xf32> to vector<8x8xbf16>
    %c2_108 = arith.constant 2 : index
    %c0_109 = arith.constant 0 : index
    %c0_110 = arith.constant 0 : index
    %215 = vector.load %arg17[%c2_108, %c0_109, %c0_110] : memref<4x8x32xbf16, #tpu.memory_space<vmem>>, vector<1x8x32xbf16>
    %216 = vector.shape_cast %215 : vector<1x8x32xbf16> to vector<8x32xbf16>
    %cst_111 = arith.constant dense<0.000000e+00> : vector<8x32xf32>
    %217 = tpu.matmul %214, %216, %cst_111 {dimension_numbers = #tpu.dot_dimension_numbers<[1], [0], [0], [1], [0, 0, 1, 1], [], []>} : vector<8x8xbf16>, vector<8x32xbf16>, vector<8x32xf32> -> vector<8x32xf32>
    %218 = arith.addf %197, %217 : vector<8x32xf32>
    %219 = vector.extract_strided_slice %154 {offsets = [0, 24], sizes = [8, 8], strides = [1, 1]} : vector<8x32xbf16> to vector<8x8xbf16>
    %c0_112 = arith.constant 0 : index
    %c24_113 = arith.constant 24 : index
    %220 = vector.load %arg30[%c0_112, %c24_113] : memref<8x32xbf16, #tpu.memory_space<vmem>>, vector<8x8xbf16>
    %c0_114 = arith.constant 0 : index
    %c24_115 = arith.constant 24 : index
    %221 = vector.load %arg31[%c0_114, %c24_115] : memref<8x32xbf16, #tpu.memory_space<vmem>>, vector<8x8xbf16>
    %cst_116 = arith.constant dense<0.000000e+00> : vector<8x8xf32>
    %222 = tpu.matmul %219, %220, %cst_116 {dimension_numbers = #tpu.dot_dimension_numbers<[1], [1], [0], [0], [0, 0, 1, 0], [], []>} : vector<8x8xbf16>, vector<8x8xbf16>, vector<8x8xf32> -> vector<8x8xf32>
    %cst_117 = arith.constant dense<0xFF800000> : vector<8xf32>
    %223 = vector.multi_reduction <maximumf>, %222, %cst_117 [1] : vector<8x8xf32> to vector<8xf32>
    %224 = vector.shape_cast %223 : vector<8xf32> to vector<8x1xf32>
    %225 = vector.broadcast %224 : vector<8x1xf32> to vector<8x8xf32>
    %226 = arith.subf %222, %225 : vector<8x8xf32>
    %227 = math.exp %226 : vector<8x8xf32>
    %cst_118 = arith.constant dense<0.000000e+00> : vector<8xf32>
    %228 = vector.multi_reduction <add>, %227, %cst_118 [1] : vector<8x8xf32> to vector<8xf32>
    %229 = vector.shape_cast %228 : vector<8xf32> to vector<8x1xf32>
    %230 = arith.truncf %227 : vector<8x8xf32> to vector<8x8xbf16>
    %cst_119 = arith.constant dense<0.000000e+00> : vector<8x8xf32>
    %231 = tpu.matmul %230, %221, %cst_119 {dimension_numbers = #tpu.dot_dimension_numbers<[1], [0], [0], [1], [0, 0, 1, 1], [], []>} : vector<8x8xbf16>, vector<8x8xbf16>, vector<8x8xf32> -> vector<8x8xf32>
    %232 = tpu.reciprocal %229 {approx = true} : vector<8x1xf32> -> vector<8x1xf32>
    %233 = vector.broadcast %232 : vector<8x1xf32> to vector<8x8xf32>
    %234 = arith.mulf %231, %233 : vector<8x8xf32>
    %235 = arith.truncf %234 : vector<8x8xf32> to vector<8x8xbf16>
    %c3_120 = arith.constant 3 : index
    %c0_121 = arith.constant 0 : index
    %c0_122 = arith.constant 0 : index
    %236 = vector.load %arg17[%c3_120, %c0_121, %c0_122] : memref<4x8x32xbf16, #tpu.memory_space<vmem>>, vector<1x8x32xbf16>
    %237 = vector.shape_cast %236 : vector<1x8x32xbf16> to vector<8x32xbf16>
    %cst_123 = arith.constant dense<0.000000e+00> : vector<8x32xf32>
    %238 = tpu.matmul %235, %237, %cst_123 {dimension_numbers = #tpu.dot_dimension_numbers<[1], [0], [0], [1], [0, 0, 1, 1], [], []>} : vector<8x8xbf16>, vector<8x32xbf16>, vector<8x32xf32> -> vector<8x32xf32>
    %239 = arith.addf %218, %238 : vector<8x32xf32>
    %240 = vector.broadcast %151 : vector<1x32xf32> to vector<8x32xf32>
    %241 = arith.addf %239, %240 : vector<8x32xf32>
    %242 = arith.addf %123, %241 : vector<8x32xf32>
    %c0_124 = arith.constant 0 : index
    %c0_125 = arith.constant 0 : index
    %243 = vector.load %arg19[%c0_124, %c0_125] : memref<1x32xf32, #tpu.memory_space<vmem>>, vector<1x32xf32>
    %c0_126 = arith.constant 0 : index
    %c0_127 = arith.constant 0 : index
    %244 = vector.load %arg20[%c0_126, %c0_127] : memref<1x32xf32, #tpu.memory_space<vmem>>, vector<1x32xf32>
    %cst_128 = arith.constant dense<0.000000e+00> : vector<8xf32>
    %245 = vector.multi_reduction <add>, %242, %cst_128 [1] : vector<8x32xf32> to vector<8xf32>
    %246 = vector.shape_cast %245 : vector<8xf32> to vector<8x1xf32>
    %cst_129 = arith.constant 3.200000e+01 : f32
    %247 = vector.broadcast %cst_129 : f32 to vector<8x1xf32>
    %248 = arith.divf %246, %247 : vector<8x1xf32>
    %249 = vector.broadcast %248 : vector<8x1xf32> to vector<8x32xf32>
    %250 = arith.subf %242, %249 : vector<8x32xf32>
    %251 = arith.mulf %250, %250 : vector<8x32xf32>
    %cst_130 = arith.constant dense<0.000000e+00> : vector<8xf32>
    %252 = vector.multi_reduction <add>, %251, %cst_130 [1] : vector<8x32xf32> to vector<8xf32>
    %253 = vector.shape_cast %252 : vector<8xf32> to vector<8x1xf32>
    %cst_131 = arith.constant 3.200000e+01 : f32
    %254 = vector.broadcast %cst_131 : f32 to vector<8x1xf32>
    %255 = arith.divf %253, %254 : vector<8x1xf32>
    %256 = vector.broadcast %248 : vector<8x1xf32> to vector<8x32xf32>
    %257 = arith.subf %242, %256 : vector<8x32xf32>
    %cst_132 = arith.constant 9.99999974E-6 : f32
    %258 = vector.broadcast %cst_132 : f32 to vector<8x1xf32>
    %259 = arith.addf %255, %258 : vector<8x1xf32>
    %260 = math.rsqrt %259 : vector<8x1xf32>
    %261 = vector.broadcast %260 : vector<8x1xf32> to vector<8x32xf32>
    %262 = arith.mulf %257, %261 : vector<8x32xf32>
    %263 = vector.broadcast %243 : vector<1x32xf32> to vector<8x32xf32>
    %264 = arith.mulf %262, %263 : vector<8x32xf32>
    %265 = vector.broadcast %244 : vector<1x32xf32> to vector<8x32xf32>
    %266 = arith.addf %264, %265 : vector<8x32xf32>
    %267 = arith.truncf %266 : vector<8x32xf32> to vector<8x32xbf16>
    %c0_133 = arith.constant 0 : index
    %c0_134 = arith.constant 0 : index
    %268 = vector.load %arg21[%c0_133, %c0_134] : memref<32x128xbf16, #tpu.memory_space<vmem>>, vector<32x128xbf16>
    %cst_135 = arith.constant dense<0.000000e+00> : vector<8x128xf32>
    %269 = tpu.matmul %267, %268, %cst_135 {dimension_numbers = #tpu.dot_dimension_numbers<[1], [0], [0], [1], [0, 0, 1, 1], [], []>} : vector<8x32xbf16>, vector<32x128xbf16>, vector<8x128xf32> -> vector<8x128xf32>
    %c0_136 = arith.constant 0 : index
    %c0_137 = arith.constant 0 : index
    %270 = vector.load %arg22[%c0_136, %c0_137] : memref<1x128xf32, #tpu.memory_space<vmem>>, vector<1x128xf32>
    %271 = vector.broadcast %270 : vector<1x128xf32> to vector<8x128xf32>
    %272 = arith.addf %269, %271 : vector<8x128xf32>
    %c0_138 = arith.constant 0 : index
    %c0_139 = arith.constant 0 : index
    %273 = vector.load %arg23[%c0_138, %c0_139] : memref<32x128xbf16, #tpu.memory_space<vmem>>, vector<32x128xbf16>
    %cst_140 = arith.constant dense<0.000000e+00> : vector<8x128xf32>
    %274 = tpu.matmul %267, %273, %cst_140 {dimension_numbers = #tpu.dot_dimension_numbers<[1], [0], [0], [1], [0, 0, 1, 1], [], []>} : vector<8x32xbf16>, vector<32x128xbf16>, vector<8x128xf32> -> vector<8x128xf32>
    %c0_141 = arith.constant 0 : index
    %c0_142 = arith.constant 0 : index
    %275 = vector.load %arg24[%c0_141, %c0_142] : memref<1x128xf32, #tpu.memory_space<vmem>>, vector<1x128xf32>
    %276 = vector.broadcast %275 : vector<1x128xf32> to vector<8x128xf32>
    %277 = arith.addf %274, %276 : vector<8x128xf32>
    %cst_143 = arith.constant 5.000000e-01 : f32
    %278 = vector.broadcast %cst_143 : f32 to vector<8x128xf32>
    %279 = arith.mulf %278, %277 : vector<8x128xf32>
    %cst_144 = arith.constant 4.471500e-02 : f32
    %280 = vector.broadcast %cst_144 : f32 to vector<8x128xf32>
    %281 = arith.mulf %280, %277 : vector<8x128xf32>
    %282 = arith.mulf %281, %277 : vector<8x128xf32>
    %283 = arith.mulf %282, %277 : vector<8x128xf32>
    %284 = arith.addf %277, %283 : vector<8x128xf32>
    %cst_145 = arith.constant 0.797884583 : f32
    %285 = vector.broadcast %cst_145 : f32 to vector<8x128xf32>
    %286 = arith.mulf %285, %284 : vector<8x128xf32>
    %287 = math.tanh %286 : vector<8x128xf32>
    %cst_146 = arith.constant 1.000000e+00 : f32
    %288 = vector.broadcast %cst_146 : f32 to vector<8x128xf32>
    %289 = arith.addf %288, %287 : vector<8x128xf32>
    %290 = arith.mulf %279, %289 : vector<8x128xf32>
    %291 = arith.mulf %272, %290 : vector<8x128xf32>
    %292 = arith.truncf %291 : vector<8x128xf32> to vector<8x128xbf16>
    %c0_147 = arith.constant 0 : index
    %c0_148 = arith.constant 0 : index
    %293 = vector.load %arg25[%c0_147, %c0_148] : memref<128x32xbf16, #tpu.memory_space<vmem>>, vector<128x32xbf16>
    %cst_149 = arith.constant dense<0.000000e+00> : vector<8x32xf32>
    %294 = tpu.matmul %292, %293, %cst_149 {dimension_numbers = #tpu.dot_dimension_numbers<[1], [0], [0], [1], [0, 0, 1, 1], [], []>} : vector<8x128xbf16>, vector<128x32xbf16>, vector<8x32xf32> -> vector<8x32xf32>
    %c0_150 = arith.constant 0 : index
    %c0_151 = arith.constant 0 : index
    %295 = vector.load %arg26[%c0_150, %c0_151] : memref<1x32xf32, #tpu.memory_space<vmem>>, vector<1x32xf32>
    %296 = vector.broadcast %295 : vector<1x32xf32> to vector<8x32xf32>
    %297 = arith.addf %294, %296 : vector<8x32xf32>
    %298 = arith.addf %242, %297 : vector<8x32xf32>
    %c0_152 = arith.constant 0 : index
    %c0_153 = arith.constant 0 : index
    %c0_154 = arith.constant 0 : index
    %299 = vector.load %arg27[%c0_152, %c0_153, %c0_154] : memref<1x8x32xf32, #tpu.memory_space<vmem>>, vector<1x8x32xf32>
    %300 = vector.shape_cast %299 : vector<1x8x32xf32> to vector<8x32xf32>
    %301 = vector.shape_cast %298 : vector<8x32xf32> to vector<1x8x32xf32>
    tpu.vector_store %arg27[%c0_152, %c0_153, %c0_154], %301 {strides = array<i32>} : memref<1x8x32xf32, #tpu.memory_space<vmem>>, vector<1x8x32xf32>,
    return
  }
  func.func @transform_0(%arg0: i32, %arg1: i32) -> (i32, i32, i32) {
    %c0_i32 = arith.constant 0 : i32
    %c0_i32_0 = arith.constant 0 : i32
    return %arg0, %arg1, %c0_i32 : i32, i32, i32
  }
  func.func @transform_1(%arg0: i32, %arg1: i32) -> (i32, i32, i32) {
    %c0_i32 = arith.constant 0 : i32
    %c0_i32_0 = arith.constant 0 : i32
    %c0_i32_1 = arith.constant 0 : i32
    return %arg0, %c0_i32, %c0_i32_0 : i32, i32, i32
  }
  func.func @transform_2(%arg0: i32, %arg1: i32) -> (i32, i32, i32) {
    %c0_i32 = arith.constant 0 : i32
    %c0_i32_0 = arith.constant 0 : i32
    %c0_i32_1 = arith.constant 0 : i32
    return %arg0, %c0_i32, %c0_i32_0 : i32, i32, i32
  }
  func.func @transform_3(%arg0: i32, %arg1: i32) -> (i32, i32) {
    %c0_i32 = arith.constant 0 : i32
    %c0_i32_0 = arith.constant 0 : i32
    %c0_i32_1 = arith.constant 0 : i32
    return %c0_i32, %c0_i32_0 : i32, i32
  }
  func.func @transform_4(%arg0: i32, %arg1: i32) -> (i32, i32) {
    %c0_i32 = arith.constant 0 : i32
    %c0_i32_0 = arith.constant 0 : i32
    %c0_i32_1 = arith.constant 0 : i32
    return %c0_i32, %c0_i32_0 : i32, i32
  }
  func.func @transform_5(%arg0: i32, %arg1: i32) -> (i32, i32) {
    %c0_i32 = arith.constant 0 : i32
    %c0_i32_0 = arith.constant 0 : i32
    %c0_i32_1 = arith.constant 0 : i32
    return %c0_i32, %c0_i32_0 : i32, i32
  }
  func.func @transform_6(%arg0: i32, %arg1: i32) -> (i32, i32) {
    %c0_i32 = arith.constant 0 : i32
    %c0_i32_0 = arith.constant 0 : i32
    %c0_i32_1 = arith.constant 0 : i32
    return %c0_i32, %c0_i32_0 : i32, i32
  }
  func.func @transform_7(%arg0: i32, %arg1: i32) -> (i32, i32) {
    %c0_i32 = arith.constant 0 : i32
    %c0_i32_0 = arith.constant 0 : i32
    %c0_i32_1 = arith.constant 0 : i32
    return %c0_i32, %c0_i32_0 : i32, i32
  }
  func.func @transform_8(%arg0: i32, %arg1: i32) -> (i32, i32, i32) {
    %c0_i32 = arith.constant 0 : i32
    %c0_i32_0 = arith.constant 0 : i32
    %c0_i32_1 = arith.constant 0 : i32
    %c0_i32_2 = arith.constant 0 : i32
    return %c0_i32, %c0_i32_0, %c0_i32_1 : i32, i32, i32
  }
  func.func @transform_9(%arg0: i32, %arg1: i32) -> (i32, i32) {
    %c0_i32 = arith.constant 0 : i32
    %c0_i32_0 = arith.constant 0 : i32
    %c0_i32_1 = arith.constant 0 : i32
    return %c0_i32, %c0_i32_0 : i32, i32
  }
  func.func @transform_10(%arg0: i32, %arg1: i32) -> (i32, i32) {
    %c0_i32 = arith.constant 0 : i32
    %c0_i32_0 = arith.constant 0 : i32
    %c0_i32_1 = arith.constant 0 : i32
    return %c0_i32, %c0_i32_0 : i32, i32
  }
  func.func @transform_11(%arg0: i32, %arg1: i32) -> (i32, i32) {
    %c0_i32 = arith.constant 0 : i32
    %c0_i32_0 = arith.constant 0 : i32
    %c0_i32_1 = arith.constant 0 : i32
    return %c0_i32, %c0_i32_0 : i32, i32
  }
  func.func @transform_12(%arg0: i32, %arg1: i32) -> (i32, i32) {
    %c0_i32 = arith.constant 0 : i32
    %c0_i32_0 = arith.constant 0 : i32
    %c0_i32_1 = arith.constant 0 : i32
    return %c0_i32, %c0_i32_0 : i32, i32
  }
  func.func @transform_13(%arg0: i32, %arg1: i32) -> (i32, i32) {
    %c0_i32 = arith.constant 0 : i32
    %c0_i32_0 = arith.constant 0 : i32
    %c0_i32_1 = arith.constant 0 : i32
    return %c0_i32, %c0_i32_0 : i32, i32
  }
  func.func @transform_14(%arg0: i32, %arg1: i32) -> (i32, i32) {
    %c0_i32 = arith.constant 0 : i32
    %c0_i32_0 = arith.constant 0 : i32
    %c0_i32_1 = arith.constant 0 : i32
    return %c0_i32, %c0_i32_0 : i32, i32
  }
  func.func @transform_15(%arg0: i32, %arg1: i32) -> (i32, i32, i32) {
    %c0_i32 = arith.constant 0 : i32
    %c0_i32_0 = arith.constant 0 : i32
    %c0_i32_1 = arith.constant 0 : i32
    %c0_i32_2 = arith.constant 0 : i32
    return %c0_i32, %c0_i32_0, %c0_i32_1 : i32, i32, i32
  }
  func.func @transform_16(%arg0: i32, %arg1: i32) -> (i32, i32) {
    %c0_i32 = arith.constant 0 : i32
    %c0_i32_0 = arith.constant 0 : i32
    %c0_i32_1 = arith.constant 0 : i32
    return %c0_i32, %c0_i32_0 : i32, i32
  }
  func.func @transform_17(%arg0: i32, %arg1: i32) -> (i32, i32) {
    %c0_i32 = arith.constant 0 : i32
    %c0_i32_0 = arith.constant 0 : i32
    %c0_i32_1 = arith.constant 0 : i32
    return %c0_i32, %c0_i32_0 : i32, i32
  }
  func.func @transform_18(%arg0: i32, %arg1: i32) -> (i32, i32) {
    %c0_i32 = arith.constant 0 : i32
    %c0_i32_0 = arith.constant 0 : i32
    %c0_i32_1 = arith.constant 0 : i32
    return %c0_i32, %c0_i32_0 : i32, i32
  }
  func.func @transform_19(%arg0: i32, %arg1: i32) -> (i32, i32) {
    %c0_i32 = arith.constant 0 : i32
    %c0_i32_0 = arith.constant 0 : i32
    %c0_i32_1 = arith.constant 0 : i32
    return %c0_i32, %c0_i32_0 : i32, i32
  }
  func.func @transform_20(%arg0: i32, %arg1: i32) -> (i32, i32) {
    %c0_i32 = arith.constant 0 : i32
    %c0_i32_0 = arith.constant 0 : i32
    %c0_i32_1 = arith.constant 0 : i32
    return %c0_i32, %c0_i32_0 : i32, i32
  }
  func.func @transform_21(%arg0: i32, %arg1: i32) -> (i32, i32) {
    %c0_i32 = arith.constant 0 : i32
    %c0_i32_0 = arith.constant 0 : i32
    %c0_i32_1 = arith.constant 0 : i32
    return %c0_i32, %c0_i32_0 : i32, i32
  }
  func.func @transform_22(%arg0: i32, %arg1: i32) -> (i32, i32) {
    %c0_i32 = arith.constant 0 : i32
    %c0_i32_0 = arith.constant 0 : i32
    %c0_i32_1 = arith.constant 0 : i32
    return %c0_i32, %c0_i32_0 : i32, i32
  }
  func.func @transform_23(%arg0: i32, %arg1: i32) -> (i32, i32) {
    %c0_i32 = arith.constant 0 : i32
    %c0_i32_0 = arith.constant 0 : i32
    %c0_i32_1 = arith.constant 0 : i32
    return %c0_i32, %c0_i32_0 : i32, i32
  }
  func.func @transform_24(%arg0: i32, %arg1: i32) -> (i32, i32) {
    %c0_i32 = arith.constant 0 : i32
    %c0_i32_0 = arith.constant 0 : i32
    %c0_i32_1 = arith.constant 0 : i32
    return %c0_i32, %c0_i32_0 : i32, i32
  }
  func.func @transform_25(%arg0: i32, %arg1: i32) -> (i32, i32, i32) {
    %c0_i32 = arith.constant 0 : i32
    %c0_i32_0 = arith.constant 0 : i32
    return %arg0, %arg1, %c0_i32 : i32, i32, i32
  }
}

</mosaic_0001>

<bundles_post_ra>
// kernel: tpu_custom_call.1
= control target key start
LH: loop header
LB: loop body
LE: loop exit
PB: predicated region body
PF: predicated region fallthrough
CT: control target
= control target key end

     0   :  { %s5506_s0 = inlined_call_operand.vmem [shape: f32[2,16,32], index: 0, kind: input, shape index: {}]   ;;  %s5507_s1 = inlined_call_operand.vmem [shape: f32[2,16,32], index: 1, kind: input, shape index: {}]   ;;  %s5508_s2 = inlined_call_operand.vmem [shape: f32[2,8,16], index: 2, kind: input, shape index: {}]   ;;  %s5509_s3 = inlined_call_operand.hbm [shape: f32[1,32], index: 3, kind: input, shape index: {}]   ;;  %s5510_s4 = inlined_call_operand.hbm [shape: f32[1,32], index: 4, kind: input, shape index: {}]   ;;  %s5511_s5 = inlined_call_operand.hbm [shape: bf16[32,32], index: 5, kind: input, shape index: {}]   ;;  %s5512_s6 = inlined_call_operand.hbm [shape: bf16[32,32], index: 6, kind: input, shape index: {}]   ;;  %s5513_s7 = inlined_call_operand.hbm [shape: bf16[32,32], index: 7, kind: input, shape index: {}]   ;;  %s5514_s8 = inlined_call_operand.hbm [shape: bf16[4,8,32], index: 8, kind: input, shape index: {}]   ;;  %s5515_s9 = inlined_call_operand.hbm [shape: f32[1,32], index: 9, kind: input, shape index: {}]   ;;  %s5516_s10 = inlined_call_operand.hbm [shape: f32[1,32], index: 10, kind: input, shape index: {}]   ;;  %s5517_s11 = inlined_call_operand.hbm [shape: f32[1,32], index: 11, kind: input, shape index: {}]   ;;  %s5518_s12 = inlined_call_operand.vmem [shape: bf16[32,32], index: 12, kind: input, shape index: {}]   ;;  %s5519_s13 = inlined_call_operand.hbm [shape: bf16[16,32], index: 13, kind: input, shape index: {}]   ;;  %s5520_s14 = inlined_call_operand.hbm [shape: bf16[16,32], index: 14, kind: input, shape index: {}]   ;;  %s5521_s15 = inlined_call_operand.vmem [shape: bf16[4,8,32], index: 15, kind: input, shape index: {}]   ;;  %s5522_s16 = inlined_call_operand.hbm [shape: f32[1,32], index: 16, kind: input, shape index: {}]   ;;  %s5523_s17 = inlined_call_operand.hbm [shape: f32[1,32], index: 17, kind: input, shape index: {}]   ;;  %s5524_s18 = inlined_call_operand.vmem [shape: f32[1,32], index: 18, kind: input, shape index: {}]   ;;  %s5525_s19 = inlined_call_operand.vmem [shape: bf16[32,128], index: 19, kind: input, shape index: {}]   ;;  %s5526_s20 = inlined_call_operand.vmem [shape: f32[1,128], index: 20, kind: input, shape index: {}]   ;;  %s5527_s21 = inlined_call_operand.hbm [shape: bf16[32,128], index: 21, kind: input, shape index: {}]   ;;  %s5528_s22 = inlined_call_operand.vmem [shape: f32[1,128], index: 22, kind: input, shape index: {}]   ;;  %s5529_s23 = inlined_call_operand.vmem [shape: bf16[128,32], index: 23, kind: input, shape index: {}]   ;;  %s5530_s24 = inlined_call_operand.vmem [shape: f32[1,32], index: 24, kind: input, shape index: {}]   ;;  %s5531_s25 = inlined_call_operand.hbm [shape: f32[2,16,32], index: 25, kind: output, shape index: {}]  }
   0x1   :  { %5567 = sst [smem:[#allocation49_spill]] %s5506_s0 }
   0x2   :  { %5568 = sst [smem:[#allocation50_spill]] %s5507_s1 }
   0x3   :  { %5569 = sst [smem:[#allocation51_spill]] %s5508_s2 }
   0x4   :  { %5570 = sst [smem:[#allocation52_spill]] %s5509_s3 }
   0x5   :  { %5571 = sst [smem:[#allocation53_spill]] %s5510_s4 }
   0x6   :  { %5572 = sst [smem:[#allocation54_spill]] %s5511_s5 }
   0x7   :  { %5573 = sst [smem:[#allocation55_spill]] %s5512_s6 }
   0x8   :  { %5574 = sst [smem:[#allocation56_spill]] %s5513_s7 }
   0x9   :  { %5575 = sst [smem:[#allocation57_spill]] %s5514_s8 }
   0xa   :  { %5576 = sst [smem:[#allocation58_spill]] %s5515_s9 }
   0xb   :  { %5577 = sst [smem:[#allocation59_spill]] %s5516_s10 }
   0xc   :  { %5578 = sst [smem:[#allocation60_spill]] %s5517_s11 }
   0xd   :  { %5579 = sst [smem:[#allocation61_spill]] %s5519_s13 }
   0xe   :  { %5580 = sst [smem:[#allocation62_spill]] %s5521_s15 }
   0xf   :  { %5581 = sst [smem:[#allocation63_spill]] %s5522_s16 }
  0x10   :  { %5582 = sst [smem:[#allocation64_spill]] %s5524_s18 }
  0x11   :  { %5583 = sst [smem:[#allocation65_spill]] %s5525_s19 }
  0x12   :  { %5584 = sst [smem:[#allocation66_spill]] %s5526_s20 }
  0x13   :  { %5585 = sst [smem:[#allocation67_spill]] %s5528_s22 }
  0x14   :  { %5586 = sst [smem:[#allocation68_spill]] %s5529_s23 }
  0x15   :  { %5587 = sst [smem:[#allocation69_spill]] %s5530_s24 }
  0x16   :  { %5588 = sst [smem:[#allocation70_spill]] %s5531_s25 }
  0x17   :  { %30 = vsyncpa [#allocation7], 0 }
  0x18   :  { %31 = vsyncpa [#allocation10], 0 }
  0x19   :  { %32 = vsyncpa [#allocation13], 0 }
  0x1a   :  { %33 = vsyncpa [#allocation16], 0 }
  0x1b   :  { %34 = vsyncpa [#allocation19], 0 }
  0x1c   :  { %35 = vsyncpa [#allocation22], 0 }
  0x1d   :  { %36 = vsyncpa [#allocation25], 0 }
  0x1e   :  { %37 = vsyncpa [#allocation28], 0 }
  0x1f   :  { %38 = vsyncpa [#allocation8], 0 }
  0x20   :  { %40 = vsyncpa [#allocation8 + $0x1], 0  ;;  %s4694_s29 = smov 0   ;;  %s4696_s2 = smov 0  }
  0x21   :  { %s4698_s6 = smov 0   ;;  %s4700_s30 = smov 0  }
  0x22   :  { %s4702_s7 = smov 0   ;;  %s4704_s3 = smov 0  }
  0x23   :  { %s4706_s26 = smov 0   ;;  %s4708_s1 = smov 0  }
  0x24 LB: > { %5589 = sst [smem:[#allocation39_spill]] %s4510_s29  ;;  %s3310_s8 = sadd.s32 4294967295, %s4538_s1   ;;  %s4538_s1 = sphi %s4708_s1, %s46_s1   ;;  %s4534_s26 = sphi %s4706_s26, %s5647_s26   ;;  %s4530_s3 = sphi %s4704_s3, %s5646_s3   ;;  %s4526_s7 = sphi %s4702_s7, %s5645_s7   ;;  %s4522_s30 = sphi %s4700_s30, %s5644_s30   ;;  %s4518_s6 = sphi %s4698_s6, %s5643_s6   ;;  %s4514_s2 = sphi %s4696_s2, %s5649_s2   ;;  %s4510_s29 = sphi %s4694_s29, %s5648_s29  }
  0x25   : > { %5590 = sst [smem:[#allocation40_spill]] %s4518_s6  ;;  %s3311_s27 = sadd.s32 4294967294, %s4538_s1  }
  0x26   : > { %5591 = sst [smem:[#allocation41_spill]] %s4530_s3  ;;  %s55_s4 = sadd.s32 1, %s4530_s3 }
  0x27   : > { %5592 = sst [smem:[#allocation42_spill]] %s4534_s26  ;;  %s58_s28 = sadd.s32 1, %s4534_s26 }
  0x28   : > { %5593 = sst [smem:[#allocation43_spill]] %s4538_s1  ;;  %p56_p0 = scmp.ge.s32.totalorder %s55_s4, 2 }
  0x29   : > { %s609_s9 = sadd.s32 1, %s4518_s6  ;;  %p619_p1 = scmp.ne.s32.totalorder %s4518_s6, %s4514_s2 }
  0x2a   : > { %p620_p2 = scmp.eq.s32.totalorder %s3310_s8, 3  ;;  %s5651_s4 = smov (%p56_p0, %s55_s4), 0 }
  0x2b   : > { %5594 = sst [smem:[#allocation44_spill]] %s5651_s4  ;;  %s5653_s28 = smov (!%p56_p0, %s58_s28), %s4534_s26 }
  0x2c   : > { %s605_s5 = ssub.s32 %s4530_s3, %s5651_s4  ;;  %p4746_p3 = por %p620_p2, %p619_p1 }
  0x2d   : > { %p60_p4 = scmp.ge.s32.totalorder %s5653_s28, 2  ;;  %p625_p5 = scmp.ne.s32.totalorder %s4514_s2, %s4510_s29 }
  0x2e   : > { %s5595_s0 = scalar_select %p4746_p3, 1, 0 }
  0x2f   : > { %p626_p6 = scmp.eq.s32.totalorder %s3311_s27, 3  ;;  %p3312_p7 = scmp.ge.s32.totalorder %s4538_s1, 1 }
  0x30   : > { %5596 = sst [smem:[#allocation45_spill]] %s5595_s0  ;;  %s5655_s28 = smov (%p60_p4, %s5653_s28), 0 }
  0x31   : > { %5597 = sst [smem:[#allocation46_spill]] %s5655_s28  ;;  %p4755_p8 = por %p626_p6, %p625_p5 }
  0x32   : > { %p633_p9 = scmp.lt.s32.totalorder %s4538_s1, 5  ;;  %s604_s24 = ssub.s32 %s4534_s26, %s5655_s28 }
  0x33   : > { %s5598_s25 = scalar_select %p4755_p8, 1, 0 }
  0x34   : > { %s606_s20 = sor.u32 %s605_s5, %s604_s24  ;;  %p4762_p10 = pnand %p3312_p7, %p633_p9 }
  0x35   : > { %5599 = sst [smem:[#allocation47_spill]] %s5598_s25  ;;  %p607_p11 = scmp.eq.s32.totalorder %s606_s20, 0 }
  0x36   : > { %s5600_s4 = scalar_select %p4762_p10, 1, 0 }
  0x37   : > { %p4766_p12 = scmp.eq.s32.totalorder %s3310_s8, 0  ;;  %p3789_p13 = pneg %p4762_p10 }
  0x38   : > { %s4773_s27 = scalar_select %p607_p11, %s4518_s6, %s609_s9  }
  0x39   : > { %s5601_s3 = scalar_select %p4766_p12, 1, 0 }
  0x3a   : > { %5602 = sst [smem:[#allocation48_spill]] %s4773_s27  ;;  %p4777_p0 = pnand %p4766_p12, %p3789_p13 }
  0x3b   : > { %s4540_s24 = smov [#allocation9]   ;;  %s5604_s8 = sld [smem:[#allocation53_spill]] }
  0x3c   : > { %s665_s5 = sshll.u32 %s4540_s24, 4  ;;  %p4789_p2 = pneg %p4777_p0  ;;  %s666_s5 = int_to_ptr.vmem [resolvable:$true] %s665_s5 }
  0x41   : > { %s4020_s26 = scalar_lea.hbm %s5604_s8, 16 }
  0x42   : > { %p4021_p1 = scmp.ne.s32.totalorder %s5604_s8, %s4020_s26  ;;  %p4027_p6 = scmp.lt.u32.totalorder %s4020_s26, %s5604_s8 }
  0x44   : > { %p4023_p4 = pnand %p4789_p2, %p4021_p1 }
  0x46   : > { %p4024_p5 = pneg %p4023_p4 }
  0x48   : > { %p4029_p7 = pnand %p4027_p6, %p4024_p5 }
  0x4a   : > { %4032 = shalt.err (!%p4029_p7)
}
  0x4b   : > { %s4033_s28 = scalar_lea.vmem %s666_s5, 16  ;;  %s4040_s29 = scalar_lea.vmem %s666_s5, 32 }
  0x4c   : > { %p4034_p9 = scmp.ne.s32.totalorder %s666_s5, %s4033_s28  ;;  %p4041_p8 = scmp.lt.s32.totalorder %s666_s5, %s666_s5 }
  0x4d   : > { %p4042_p3 = scmp.lt.s32.totalorder %s4040_s29, %s4033_s28 }
  0x4e   : > { %p4036_p11 = pnand %p4034_p9, %p4789_p2 }
  0x4f   : > { %p4043_p12 = por %p4042_p3, %p4041_p8 }
  0x50   : > { %p4037_p13 = pneg %p4036_p11 }
  0x52   : > { %p4044_p10 = pnand %p4043_p12, %p4037_p13 }
  0x54   : > { %4047 = shalt.err (!%p4044_p10)
}
  0x55   : > { %3795 = dma.hbm_to_vmem [thread:$0]  (!%p4777_p0), %s5604_s8, 16, %s666_s5, [#allocation10]  }
  0x56   : > { %s4541_s26 = smov [#allocation12]   ;;  %s4542_s24 = smov [#allocation15]  }
  0x57   : > { %s688_s27 = sshll.u32 %s4541_s26, 4  ;;  %s714_s6 = sshll.u32 %s4542_s24, 4  ;;  %s689_s27 = int_to_ptr.vmem [resolvable:$true] %s688_s27  ;;  %s4805_s6 = int_to_ptr.vmem [resolvable:$true] %s714_s6 }
  0x58   : > { %s5606_s28 = sld [smem:[#allocation55_spill]] }
  0x5e   : > { %s4048_s29 = scalar_lea.hbm %s5606_s28, 256 }
  0x5f   : > { %p4049_p3 = scmp.ne.s32.totalorder %s5606_s28, %s4048_s29  ;;  %p4055_p12 = scmp.lt.u32.totalorder %s4048_s29, %s5606_s28 }
  0x61   : > { %p4051_p8 = pnand %p4049_p3, %p4789_p2 }
  0x63   : > { %p4052_p10 = pneg %p4051_p8 }
  0x65   : > { %p4057_p1 = pnand %p4055_p12, %p4052_p10 }
  0x67   : > { %4060 = shalt.err (!%p4057_p1)
}
  0x68   : > { %s4061_s20 = scalar_lea.vmem %s689_s27, 256  ;;  %p4069_p7 = scmp.lt.s32.totalorder %s689_s27, %s689_s27 }
  0x69   : > { %p4062_p4 = scmp.ne.s32.totalorder %s689_s27, %s4061_s20  ;;  %p4070_p9 = scmp.lt.s32.totalorder %s4061_s20, %s4061_s20 }
  0x6b   : > { %p4064_p5 = pnand %p4062_p4, %p4789_p2  ;;  %p4071_p11 = por %p4070_p9, %p4069_p7 }
  0x6d   : > { %p4065_p6 = pneg %p4064_p5 }
  0x6f   : > { %p4072_p13 = pnand %p4071_p11, %p4065_p6 }
  0x71   : > { %4075 = shalt.err (!%p4072_p13)
}
  0x72   : > { %s5559_s18 = smov 64   ;;  %s5561_s22 = smov 4  }
  0x73   : > { %3801 = dma.hbm_to_vmem [thread:$0]  (!%p4777_p0), %s5606_s28, 256, %s689_s27, [#allocation13], %s5559_s18, %s5559_s18, %s5561_s22  }
  0x74   : > { %s5607_s29 = sld [smem:[#allocation57_spill]] }
  0x7a   : > { %s5608_s5 = smov %s5607_s29  ;;  %s4076_s1 = scalar_lea.hbm %s5607_s29, 256 }
  0x7b   : > { %p4077_p3 = scmp.ne.s32.totalorder %s5608_s5, %s4076_s1  ;;  %p4083_p12 = scmp.lt.u32.totalorder %s4076_s1, %s5608_s5 }
  0x7d   : > { %p4079_p8 = pnand %p4077_p3, %p4789_p2 }
  0x7f   : > { %p4080_p10 = pneg %p4079_p8 }
  0x81   : > { %p4085_p1 = pnand %p4083_p12, %p4080_p10 }
  0x83   : > { %4088 = shalt.err (!%p4085_p1)
}
  0x84   : > { %s4089_s27 = scalar_lea.vmem %s4805_s6, 256  ;;  %p4097_p7 = scmp.lt.s32.totalorder %s4805_s6, %s4805_s6 }
  0x85   : > { %p4090_p4 = scmp.ne.s32.totalorder %s4805_s6, %s4089_s27  ;;  %p4098_p9 = scmp.lt.s32.totalorder %s4089_s27, %s4089_s27 }
  0x87   : > { %p4092_p5 = pnand %p4090_p4, %p4789_p2  ;;  %p4099_p11 = por %p4098_p9, %p4097_p7 }
  0x89   : > { %p4093_p6 = pneg %p4092_p5 }
  0x8b   : > { %p4100_p13 = pnand %p4099_p11, %p4093_p6 }
  0x8d   : > { %4103 = shalt.err (!%p4100_p13)
}
  0x8e   : > { %3807 = dma.hbm_to_vmem [thread:$0]  (!%p4777_p0), %s5608_s5, 256, %s4805_s6, [#allocation16], %s5559_s18, %s5559_s18, %s5561_s22  }
  0x8f   : > { %s4545_s8 = smov [#allocation18]   ;;  %s4546_s0 = smov [#allocation21]  }
  0x90   : > { %s739_s23 = sshll.u32 %s4545_s8, 4  ;;  %s763_s26 = sshll.u32 %s4546_s0, 4  ;;  %s740_s23 = int_to_ptr.vmem [resolvable:$true] %s739_s23  ;;  %s4854_s26 = int_to_ptr.vmem [resolvable:$true] %s763_s26 }
  0x91   : > { %s5609_s10 = sld [smem:[#allocation59_spill]] }
  0x97   : > { %s4104_s1 = scalar_lea.hbm %s5609_s10, 16 }
  0x98   : > { %p4105_p3 = scmp.ne.s32.totalorder %s5609_s10, %s4104_s1  ;;  %p4111_p12 = scmp.lt.u32.totalorder %s4104_s1, %s5609_s10 }
  0x9a   : > { %p4107_p8 = pnand %p4105_p3, %p4789_p2 }
  0x9c   : > { %p4108_p10 = pneg %p4107_p8 }
  0x9e   : > { %p4113_p1 = pnand %p4111_p12, %p4108_p10 }
  0xa0   : > { %4116 = shalt.err (!%p4113_p1)
}
  0xa1   : > { %s4117_s19 = scalar_lea.vmem %s740_s23, 16  ;;  %s4124_s8 = scalar_lea.vmem %s740_s23, 32 }
  0xa2   : > { %p4118_p4 = scmp.ne.s32.totalorder %s740_s23, %s4117_s19  ;;  %p4125_p7 = scmp.lt.s32.totalorder %s740_s23, %s740_s23 }
  0xa3   : > { %p4126_p9 = scmp.lt.s32.totalorder %s4124_s8, %s4117_s19 }
  0xa4   : > { %p4120_p5 = pnand %p4118_p4, %p4789_p2 }
  0xa5   : > { %p4127_p11 = por %p4126_p9, %p4125_p7 }
  0xa6   : > { %p4121_p6 = pneg %p4120_p5 }
  0xa8   : > { %p4128_p13 = pnand %p4127_p11, %p4121_p6 }
  0xaa   : > { %4131 = shalt.err (!%p4128_p13)
}
  0xab   : > { %3813 = dma.hbm_to_vmem [thread:$0]  (!%p4777_p0), %s5609_s10, 16, %s740_s23, [#allocation19]  }
  0xac   : > { %s5610_s13 = sld [smem:[#allocation61_spill]] }
  0xb2   : > { %s4132_s20 = scalar_lea.hbm %s5610_s13, 128 }
  0xb3   : > { %p4133_p3 = scmp.ne.s32.totalorder %s5610_s13, %s4132_s20  ;;  %p4139_p12 = scmp.lt.u32.totalorder %s4132_s20, %s5610_s13 }
  0xb5   : > { %p4135_p8 = pnand %p4133_p3, %p4789_p2 }
  0xb7   : > { %p4136_p10 = pneg %p4135_p8 }
  0xb9   : > { %p4141_p1 = pnand %p4139_p12, %p4136_p10 }
  0xbb   : > { %4144 = shalt.err (!%p4141_p1)
}
  0xbc   : > { %s4145_s23 = scalar_lea.vmem %s4854_s26, 128  ;;  %p4153_p7 = scmp.lt.s32.totalorder %s4854_s26, %s4854_s26 }
  0xbd   : > { %p4146_p4 = scmp.ne.s32.totalorder %s4854_s26, %s4145_s23  ;;  %p4154_p9 = scmp.lt.s32.totalorder %s4145_s23, %s4145_s23 }
  0xbf   : > { %p4148_p5 = pnand %p4146_p4, %p4789_p2  ;;  %p4155_p11 = por %p4154_p9, %p4153_p7 }
  0xc1   : > { %p4149_p6 = pneg %p4148_p5 }
  0xc3   : > { %p4156_p13 = pnand %p4155_p11, %p4149_p6 }
  0xc5   : > { %4159 = shalt.err (!%p4156_p13)
}
  0xc6   : > { %3819 = dma.hbm_to_vmem [thread:$0]  (!%p4777_p0), %s5610_s13, 128, %s4854_s26, [#allocation22], %s5559_s18, %s5559_s18, %s5561_s22  }
  0xc7   : > { %s4547_s24 = smov [#allocation24]   ;;  %s5611_s16 = sld [smem:[#allocation63_spill]] }
  0xc8   : > { %s793_s29 = sshll.u32 %s4547_s24, 4  ;;  %s794_s29 = int_to_ptr.vmem [resolvable:$true] %s793_s29 }
  0xcd   : > { %s4160_s27 = scalar_lea.hbm %s5611_s16, 16 }
  0xce   : > { %p4161_p3 = scmp.ne.s32.totalorder %s5611_s16, %s4160_s27  ;;  %p4167_p12 = scmp.lt.u32.totalorder %s4160_s27, %s5611_s16 }
  0xd0   : > { %p4163_p8 = pnand %p4161_p3, %p4789_p2 }
  0xd2   : > { %p4164_p10 = pneg %p4163_p8 }
  0xd4   : > { %p4169_p1 = pnand %p4167_p12, %p4164_p10 }
  0xd6   : > { %4172 = shalt.err (!%p4169_p1)
}
  0xd7   : > { %s4173_s26 = scalar_lea.vmem %s794_s29, 16  ;;  %s4180_s8 = scalar_lea.vmem %s794_s29, 32 }
  0xd8   : > { %p4174_p4 = scmp.ne.s32.totalorder %s794_s29, %s4173_s26  ;;  %p4181_p7 = scmp.lt.s32.totalorder %s794_s29, %s794_s29 }
  0xd9   : > { %p4182_p9 = scmp.lt.s32.totalorder %s4180_s8, %s4173_s26 }
  0xda   : > { %p4176_p5 = pnand %p4174_p4, %p4789_p2 }
  0xdb   : > { %p4183_p11 = por %p4182_p9, %p4181_p7 }
  0xdc   : > { %p4177_p6 = pneg %p4176_p5 }
  0xde   : > { %p4184_p13 = pnand %p4183_p11, %p4177_p6 }
  0xe0   : > { %4187 = shalt.err (!%p4184_p13)
}
  0xe1   : > { %3825 = dma.hbm_to_vmem [thread:$0]  (!%p4777_p0), %s5611_s16, 16, %s794_s29, [#allocation25]  }
  0xe2   : > { %s4548_s1 = smov [#allocation6]   ;;  %s4549_s27 = smov [#allocation11]  }
  0xe3   : > { %s654_s20 = sshll.u32 %s4548_s1, 4  ;;  %s675_s15 = sshll.u32 %s4549_s27, 4  ;;  %s655_s20 = int_to_ptr.vmem [resolvable:$true] %s654_s20  ;;  %s676_s15 = int_to_ptr.vmem [resolvable:$true] %s675_s15 }
  0xe4   : > { %s5612_s23 = sld [smem:[#allocation52_spill]] }
  0xea   : > { %s4188_s18 = scalar_lea.hbm %s5612_s23, 16 }
  0xeb   : > { %p4189_p3 = scmp.ne.s32.totalorder %s5612_s23, %s4188_s18  ;;  %p4195_p12 = scmp.lt.u32.totalorder %s4188_s18, %s5612_s23 }
  0xed   : > { %p4191_p8 = pnand %p4189_p3, %p4789_p2 }
  0xef   : > { %p4192_p10 = pneg %p4191_p8 }
  0xf1   : > { %p4197_p1 = pnand %p4195_p12, %p4192_p10 }
  0xf3   : > { %4200 = shalt.err (!%p4197_p1)
}
  0xf4   : > { %s4201_s29 = scalar_lea.vmem %s655_s20, 16  ;;  %s4208_s24 = scalar_lea.vmem %s655_s20, 32 }
  0xf5   : > { %p4202_p4 = scmp.ne.s32.totalorder %s655_s20, %s4201_s29  ;;  %p4209_p7 = scmp.lt.s32.totalorder %s655_s20, %s655_s20 }
  0xf6   : > { %p4210_p9 = scmp.lt.s32.totalorder %s4208_s24, %s4201_s29 }
  0xf7   : > { %p4204_p5 = pnand %p4202_p4, %p4789_p2 }
  0xf8   : > { %p4211_p11 = por %p4210_p9, %p4209_p7 }
  0xf9   : > { %p4205_p6 = pneg %p4204_p5 }
  0xfb   : > { %p4212_p13 = pnand %p4211_p11, %p4205_p6 }
  0xfd   : > { %4215 = shalt.err (!%p4212_p13)
}
  0xfe   : > { %3792 = dma.hbm_to_vmem [thread:$0]  (!%p4777_p0), %s5612_s23, 16, %s655_s20, [#allocation7]  }
  0xff   : > { %s5613_s6 = sld [smem:[#allocation54_spill]] }
 0x105   : > { %s5614_s19 = smov %s5613_s6  ;;  %s4216_s26 = scalar_lea.hbm %s5613_s6, 256 }
 0x106   : > { %p4217_p3 = scmp.ne.s32.totalorder %s5614_s19, %s4216_s26  ;;  %p4223_p12 = scmp.lt.u32.totalorder %s4216_s26, %s5614_s19 }
 0x108   : > { %p4219_p8 = pnand %p4217_p3, %p4789_p2 }
 0x10a   : > { %p4220_p10 = pneg %p4219_p8 }
 0x10c   : > { %p4225_p1 = pnand %p4223_p12, %p4220_p10 }
 0x10e   : > { %4228 = shalt.err (!%p4225_p1)
}
 0x10f   : > { %s4229_s1 = scalar_lea.vmem %s676_s15, 256  ;;  %p4237_p7 = scmp.lt.s32.totalorder %s676_s15, %s676_s15 }
 0x110   : > { %p4230_p4 = scmp.ne.s32.totalorder %s676_s15, %s4229_s1  ;;  %p4238_p9 = scmp.lt.s32.totalorder %s4229_s1, %s4229_s1 }
 0x112   : > { %p4232_p5 = pnand %p4230_p4, %p4789_p2  ;;  %p4239_p11 = por %p4238_p9, %p4237_p7 }
 0x114   : > { %p4233_p6 = pneg %p4232_p5 }
 0x116   : > { %p4240_p13 = pnand %p4239_p11, %p4233_p6 }
 0x118   : > { %4243 = shalt.err (!%p4240_p13)
}
 0x119   : > { %s5615_s20 = smov 4   ;;  %s5616_s27 = smov 64  }
 0x11a   : > { %3798 = dma.hbm_to_vmem [thread:$0]  (!%p4777_p0), %s5614_s19, 256, %s676_s15, [#allocation10], %s5616_s27, %s5616_s27, %s5615_s20  }
 0x11b   : > { %s4550_s6 = smov [#allocation14]   ;;  %s4551_s8 = smov [#allocation17]  }
 0x11c   : > { %s701_s26 = sshll.u32 %s4550_s6, 4  ;;  %s728_s0 = sshll.u32 %s4551_s8, 4  ;;  %s702_s26 = int_to_ptr.vmem [resolvable:$true] %s701_s26  ;;  %s729_s0 = int_to_ptr.vmem [resolvable:$true] %s728_s0 }
 0x11d   : > { %s5617_s1 = sld [smem:[#allocation56_spill]] }
 0x123   : > { %s5618_s5 = smov %s5617_s1  ;;  %s4244_s10 = scalar_lea.hbm %s5617_s1, 256 }
 0x124   : > { %p4245_p3 = scmp.ne.s32.totalorder %s5618_s5, %s4244_s10  ;;  %p4251_p12 = scmp.lt.u32.totalorder %s4244_s10, %s5618_s5 }
 0x126   : > { %p4247_p8 = pnand %p4245_p3, %p4789_p2 }
 0x128   : > { %p4248_p10 = pneg %p4247_p8 }
 0x12a   : > { %p4253_p1 = pnand %p4251_p12, %p4248_p10 }
 0x12c   : > { %4256 = shalt.err (!%p4253_p1)
}
 0x12d   : > { %s4257_s15 = scalar_lea.vmem %s702_s26, 256  ;;  %p4265_p7 = scmp.lt.s32.totalorder %s702_s26, %s702_s26 }
 0x12e   : > { %p4258_p4 = scmp.ne.s32.totalorder %s702_s26, %s4257_s15  ;;  %p4266_p9 = scmp.lt.s32.totalorder %s4257_s15, %s4257_s15 }
 0x130   : > { %p4260_p5 = pnand %p4258_p4, %p4789_p2  ;;  %p4267_p11 = por %p4266_p9, %p4265_p7 }
 0x132   : > { %p4261_p6 = pneg %p4260_p5 }
 0x134   : > { %p4268_p13 = pnand %p4267_p11, %p4261_p6 }
 0x136   : > { %4271 = shalt.err (!%p4268_p13)
}
 0x137   : > { %3804 = dma.hbm_to_vmem [thread:$0]  (!%p4777_p0), %s5618_s5, 256, %s702_s26, [#allocation13], %s5616_s27, %s5616_s27, %s5615_s20  }
 0x138   : > { %s5619_s22 = sld [smem:[#allocation58_spill]] }
 0x13e   : > { %s4272_s6 = scalar_lea.hbm %s5619_s22, 16 }
 0x13f   : > { %p4273_p3 = scmp.ne.s32.totalorder %s5619_s22, %s4272_s6  ;;  %p4279_p12 = scmp.lt.u32.totalorder %s4272_s6, %s5619_s22 }
 0x141   : > { %p4275_p8 = pnand %p4273_p3, %p4789_p2 }
 0x143   : > { %p4276_p10 = pneg %p4275_p8 }
 0x145   : > { %p4281_p1 = pnand %p4279_p12, %p4276_p10 }
 0x147   : > { %4284 = shalt.err (!%p4281_p1)
}
 0x148   : > { %s4285_s18 = scalar_lea.vmem %s729_s0, 16  ;;  %s4292_s26 = scalar_lea.vmem %s729_s0, 32 }
 0x149   : > { %p4286_p4 = scmp.ne.s32.totalorder %s729_s0, %s4285_s18  ;;  %p4293_p7 = scmp.lt.s32.totalorder %s729_s0, %s729_s0 }
 0x14a   : > { %p4294_p9 = scmp.lt.s32.totalorder %s4292_s26, %s4285_s18 }
 0x14b   : > { %p4288_p5 = pnand %p4286_p4, %p4789_p2 }
 0x14c   : > { %p4295_p11 = por %p4294_p9, %p4293_p7 }
 0x14d   : > { %p4289_p6 = pneg %p4288_p5 }
 0x14f   : > { %p4296_p13 = pnand %p4295_p11, %p4289_p6 }
 0x151   : > { %4299 = shalt.err (!%p4296_p13)
}
 0x152   : > { %3810 = dma.hbm_to_vmem [thread:$0]  (!%p4777_p0), %s5619_s22, 16, %s729_s0, [#allocation16]  }
 0x153   : > { %s4552_s10 = smov [#allocation20]   ;;  %s4553_s23 = smov [#allocation23]  }
 0x154   : > { %s750_s16 = sshll.u32 %s4552_s10, 4  ;;  %s776_s6 = sshll.u32 %s4553_s23, 4  ;;  %s751_s16 = int_to_ptr.vmem [resolvable:$true] %s750_s16  ;;  %s777_s6 = int_to_ptr.vmem [resolvable:$true] %s776_s6 }
 0x155   : > { %s5620_s11 = sld [smem:[#allocation60_spill]] }
 0x15b   : > { %s4300_s24 = scalar_lea.hbm %s5620_s11, 16 }
 0x15c   : > { %p4301_p3 = scmp.ne.s32.totalorder %s5620_s11, %s4300_s24  ;;  %p4307_p12 = scmp.lt.u32.totalorder %s4300_s24, %s5620_s11 }
 0x15e   : > { %p4303_p8 = pnand %p4301_p3, %p4789_p2 }
 0x160   : > { %p4304_p10 = pneg %p4303_p8 }
 0x162   : > { %p4309_p1 = pnand %p4307_p12, %p4304_p10 }
 0x164   : > { %4312 = shalt.err (!%p4309_p1)
}
 0x165   : > { %s4313_s0 = scalar_lea.vmem %s751_s16, 16  ;;  %s4320_s13 = scalar_lea.vmem %s751_s16, 32 }
 0x166   : > { %p4314_p4 = scmp.ne.s32.totalorder %s751_s16, %s4313_s0  ;;  %p4321_p7 = scmp.lt.s32.totalorder %s751_s16, %s751_s16 }
 0x167   : > { %p4322_p9 = scmp.lt.s32.totalorder %s4320_s13, %s4313_s0 }
 0x168   : > { %p4316_p5 = pnand %p4314_p4, %p4789_p2 }
 0x169   : > { %p4323_p11 = por %p4322_p9, %p4321_p7 }
 0x16a   : > { %p4317_p6 = pneg %p4316_p5 }
 0x16c   : > { %p4324_p13 = pnand %p4323_p11, %p4317_p6 }
 0x16e   : > { %4327 = shalt.err (!%p4324_p13)
}
 0x16f   : > { %3816 = dma.hbm_to_vmem [thread:$0]  (!%p4777_p0), %s5620_s11, 16, %s751_s16, [#allocation19]  }
 0x170   : > { %s4328_s24 = scalar_lea.hbm %s5520_s14, 128 }
 0x171   : > { %p4329_p3 = scmp.ne.s32.totalorder %s5520_s14, %s4328_s24  ;;  %p4335_p12 = scmp.lt.u32.totalorder %s4328_s24, %s5520_s14 }
 0x173   : > { %p4331_p8 = pnand %p4329_p3, %p4789_p2 }
 0x175   : > { %p4332_p10 = pneg %p4331_p8 }
 0x177   : > { %p4337_p1 = pnand %p4335_p12, %p4332_p10 }
 0x179   : > { %4340 = shalt.err (!%p4337_p1)
}
 0x17a   : > { %s4341_s0 = scalar_lea.vmem %s777_s6, 128  ;;  %p4349_p7 = scmp.lt.s32.totalorder %s777_s6, %s777_s6 }
 0x17b   : > { %p4342_p4 = scmp.ne.s32.totalorder %s777_s6, %s4341_s0  ;;  %p4350_p9 = scmp.lt.s32.totalorder %s4341_s0, %s4341_s0 }
 0x17d   : > { %p4344_p5 = pnand %p4342_p4, %p4789_p2  ;;  %p4351_p11 = por %p4350_p9, %p4349_p7 }
 0x17f   : > { %p4345_p6 = pneg %p4344_p5 }
 0x181   : > { %p4352_p13 = pnand %p4351_p11, %p4345_p6 }
 0x183   : > { %4355 = shalt.err (!%p4352_p13)
}
 0x184   : > { %3822 = dma.hbm_to_vmem [thread:$0]  (!%p4777_p0), %s5520_s14, 128, %s777_s6, [#allocation22], %s5616_s27, %s5616_s27, %s5615_s20  }
 0x185   : > { %s4554_s10 = smov [#allocation26]   ;;  %s4555_s8 = smov [#allocation27]  }
 0x186   : > { %s804_s23 = sshll.u32 %s4554_s10, 4  ;;  %s823_s29 = sshll.u32 %s4555_s8, 4  ;;  %s805_s23 = int_to_ptr.vmem [resolvable:$true] %s804_s23  ;;  %s824_s29 = int_to_ptr.vmem [resolvable:$true] %s823_s29 }
 0x187   : > { %s4356_s18 = scalar_lea.hbm %s5523_s17, 16 }
 0x188   : > { %p4357_p3 = scmp.ne.s32.totalorder %s5523_s17, %s4356_s18  ;;  %p4363_p12 = scmp.lt.u32.totalorder %s4356_s18, %s5523_s17 }
 0x18a   : > { %p4359_p8 = pnand %p4357_p3, %p4789_p2 }
 0x18c   : > { %p4360_p10 = pneg %p4359_p8 }
 0x18e   : > { %p4365_p1 = pnand %p4363_p12, %p4360_p10 }
 0x190   : > { %4368 = shalt.err (!%p4365_p1)
}
 0x191   : > { %s4369_s6 = scalar_lea.vmem %s805_s23, 16  ;;  %s4376_s13 = scalar_lea.vmem %s805_s23, 32 }
 0x192   : > { %p4370_p4 = scmp.ne.s32.totalorder %s805_s23, %s4369_s6  ;;  %p4377_p7 = scmp.lt.s32.totalorder %s805_s23, %s805_s23 }
 0x193   : > { %p4378_p9 = scmp.lt.s32.totalorder %s4376_s13, %s4369_s6 }
 0x194   : > { %p4372_p5 = pnand %p4370_p4, %p4789_p2 }
 0x195   : > { %p4379_p11 = por %p4378_p9, %p4377_p7 }
 0x196   : > { %p4373_p6 = pneg %p4372_p5 }
 0x198   : > { %p4380_p13 = pnand %p4379_p11, %p4373_p6 }
 0x19a   : > { %4383 = shalt.err (!%p4380_p13)
}
 0x19b   : > { %3828 = dma.hbm_to_vmem [thread:$0]  (!%p4777_p0), %s5523_s17, 16, %s805_s23, [#allocation25]  }
 0x19c   : > { %s4384_s18 = scalar_lea.hbm %s5527_s21, 256 }
 0x19d   : > { %p4385_p3 = scmp.ne.s32.totalorder %s5527_s21, %s4384_s18  ;;  %p4391_p12 = scmp.lt.u32.totalorder %s4384_s18, %s5527_s21 }
 0x19f   : > { %p4387_p8 = pnand %p4385_p3, %p4789_p2 }
 0x1a1   : > { %p4388_p10 = pneg %p4387_p8 }
 0x1a3   : > { %p4393_p1 = pnand %p4391_p12, %p4388_p10 }
 0x1a5   : > { %4396 = shalt.err (!%p4393_p1)
}
 0x1a6   : > { %s4397_s6 = scalar_lea.vmem %s824_s29, 256  ;;  %p4405_p7 = scmp.lt.s32.totalorder %s824_s29, %s824_s29 }
 0x1a7   : > { %p4398_p4 = scmp.ne.s32.totalorder %s824_s29, %s4397_s6  ;;  %p4406_p9 = scmp.lt.s32.totalorder %s4397_s6, %s4397_s6 }
 0x1a9   : > { %p4400_p5 = pnand %p4398_p4, %p4789_p2  ;;  %p4407_p11 = por %p4406_p9, %p4405_p7 }
 0x1ab   : > { %p4401_p6 = pneg %p4400_p5 }
 0x1ad   : > { %p4408_p13 = pnand %p4407_p11, %p4401_p6 }
 0x1af   : > { %4411 = shalt.err (!%p4408_p13)
}
 0x1b0   : > { %3831 = dma.hbm_to_vmem [thread:$0]  (!%p4777_p0), %s5527_s21, 256, %s824_s29, [#allocation28], %s5616_s27, %s5616_s27, %s5615_s20  }
 0x1b1   : > { %p5621_p3 = scmp.ne.s32.totalorder %s5600_s4, 0 }
 0x1b2   : > { %p5622_p2 = scmp.ne.s32.totalorder (!%p5621_p3), %s5601_s3, 0 }
 0x1b3   : > { %866 = sbr.rel (%p5621_p3) target bundleno = 6922 (0x1b0a), region = 120 }
 0x1ba   : > { %4473 = dma.done.wait (%p5622_p2), [#allocation7], 16  }
 0x1bb   : > { %4475 = vsyncadd (%p5622_p2), [#allocation7], 4294967280 }
 0x1bc   : > { %4477 = dma.done.wait (%p5622_p2), [#allocation10], 272  }
 0x1bd   : > { %4479 = vsyncadd (%p5622_p2), [#allocation10], 4294967024 }
 0x1be   : > { %4481 = dma.done.wait (%p5622_p2), [#allocation13], 512  }
 0x1bf   : > { %4483 = vsyncadd (%p5622_p2), [#allocation13], 4294966784 }
 0x1c0   : > { %4485 = dma.done.wait (%p5622_p2), [#allocation16], 272  }
 0x1c1   : > { %4487 = vsyncadd (%p5622_p2), [#allocation16], 4294967024 }
 0x1c2   : > { %4489 = dma.done.wait (%p5622_p2), [#allocation19], 32  }
 0x1c3   : > { %4491 = vsyncadd (%p5622_p2), [#allocation19], 4294967264 }
 0x1c4   : > { %4493 = dma.done.wait (%p5622_p2), [#allocation22], 256  }
 0x1c5   : > { %4495 = vsyncadd (%p5622_p2), [#allocation22], 4294967040 }
 0x1c6   : > { %4497 = dma.done.wait (%p5622_p2), [#allocation25], 32  }
 0x1c7   : > { %4499 = vsyncadd (%p5622_p2), [#allocation25], 4294967264 }
 0x1c8   : > { %4501 = dma.done.wait (%p5622_p2), [#allocation28], 256  }
 0x1c9   : > { %4503 = vsyncadd (%p5622_p2), [#allocation28], 4294967040  ;;  %s5565_s25 = sand.u32 1, %s4514_s2   ;;  %p998_p0 = scmp.lt.s32.totalorder %s4526_s7, 1 }
 0x1ca   : > { %s5112_s4 = sshll.u32 %s5565_s25, 3  ;;  %p1000_p8 = scmp.lt.s32.totalorder %s4522_s30, 1 }
 0x1cb   : > { %s999_s9 = scalar_select %p998_p0, %s4526_s7, 1 }
 0x1cc   : > { %s1001_s20 = scalar_select %p1000_p8, %s4522_s30, 1 }
 0x1cd   : > { %s3344_s27 = sshll.u32 %s999_s9, 1  ;;  %s3427_s29 = sshll.u32 %s999_s9, 4 }
 0x1ce   : > { %s1003_s10 = sadd.s32 %s3344_s27, %s1001_s20  ;;  %s5623_s24 = sld [smem:[#allocation50_spill]] }
 0x1cf   : > { %s3345_s18 = sshll.u32 %s1003_s10, 3  ;;  %s3348_s26 = sshll.u32 %s999_s9, 3 }
 0x1d0   : > { %s5624_s16 = sld [smem:[#allocation49_spill]]  ;;  %s5625_s25 = sld [smem:[#allocation51_spill]] }
 0x1d1   : > { %s997_s11 = scalar_lea.vmem [#allocation29], %s5112_s4  ;;  %p3349_p10 = scmp.ne.s32.totalorder %s4522_s30, 0 }
 0x1d2   : > { %vm1024_vm0 = vcmask (!%p3349_p10), 261120   ;;  %v3952_v14 = vld [vmem:[#allocation12] sm:$0xff] (!%p3349_p10)   ;;  %v3953_v15 = vld [vmem:[#allocation14] sm:$0xff] (!%p3349_p10)   ;;  %v4556_v16 = vmov (!%p3349_p10), 0.0   ;;  %v3954_v17 = vld [vmem:[#allocation12 + $0x8] sm:$0xff] (!%p3349_p10)   ;;  %vm4557_vm1 = vmmov (!%p3349_p10), 0  }
 0x1d3   : > { %1019 = sbr.rel (%p3349_p10) target bundleno = 1012 (0x3f4), region = 180  ;;  %3507 = vmatprep.subr.bf16.mxu0 (!%p3349_p10), %v4556_v16  ;;  %3515 = vmatprep.subr.bf16.mxu1 (!%p3349_p10), %v4556_v16  ;;  %v3955_v18 = vld [vmem:[#allocation14 + $0x8] sm:$0xff] (!%p3349_p10)   ;;  %v3350_v27 = vld [vmem:[#allocation6] ss:$0 sm:$0xff] (!%p3349_p10)  ;;  %v3351_v31 = vld [vmem:[#allocation9] ss:$0 sm:$0xff] (!%p3349_p10) }
 0x1d4   : > { %s1010_s1 = scalar_lea.vmem %s5623_s24, %s3427_s29  ;;  %3508 = vmatpush3.bf16.msra.mxu0 (!%p3349_p10), %v3952_v14  ;;  %3516 = vmatpush3.bf16.msra.mxu1 (!%p3349_p10), %v3953_v15  ;;  %v3956_v35 = vld [vmem:[#allocation21] sm:$0xff] (!%p3349_p10)   ;;  %v3957_v36 = vld [vmem:[#allocation23] sm:$0xff] (!%p3349_p10)   ;;  %vm1200_vm2 = vcmask (!%p3349_p10), 130048   ;;  %vm1245_vm3 = vcmask (!%p3349_p10), 257024  }
 0x1d5   : > { %v1020_v0 = vld [vmem:[%s1010_s1] sm:$0xff] (!%p3349_p10)  ;;  %v1021_v1 = vld [vmem:[%s1010_s1 + $0x8] sm:$0xff] (!%p3349_p10)  ;;  %3509 = vmatprep.subr.bf16.mxu0 (!%p3349_p10), %v4556_v16  ;;  %3517 = vmatprep.subr.bf16.mxu1 (!%p3349_p10), %v4556_v16 }
 0x1d6   : > { %s5123_s6 = scalar_lea.vmem %s5624_s16, %s3345_s18  ;;  %s5128_s5 = scalar_lea.vmem %s5625_s25, %s3348_s26  ;;  %v1025_v2 = vsel (!%p3349_p10), %vm1024_vm0, %v1020_v0, 0.0  ;;  %v1028_v3 = vsel (!%p3349_p10), %vm1024_vm0, %v1021_v1, 0.0  ;;  %3511 = vmatprep.mubr.msk.bf16.mxu0 (!%p3349_p10), %vm4557_vm1, %v4556_v16  ;;  %3519 = vmatprep.mubr.msk.bf16.mxu1 (!%p3349_p10), %vm4557_vm1, %v4556_v16 }
 0x1d7   : > { %1026 = vadd.xlane.f32.xlu0 (!%p3349_p10), %v1025_v2  ;;  %v1190_v38 = vld [vmem:[%s5128_s5] sm:$0xff] (!%p3349_p10) }
 0x1d8   : > { %3510 = vmatpush3.bf16.msra.mxu0 (!%p3349_p10), %v3954_v17  ;;  %3518 = vmatpush3.bf16.msra.mxu1 (!%p3349_p10), %v3955_v18  ;;  %v1191_v39 = vpack.c.bf16 (!%p3349_p10), %v1190_v38, %v1190_v38 }
 0x1d9   : > { %3523 = vmatprep.subr.bf16.mxu0 (!%p3349_p10), %v4556_v16  ;;  %3529 = vmatprep.subr.bf16.mxu1 (!%p3349_p10), %v4556_v16 }
 0x1db   : > { %1029 = vadd.xlane.f32.xlu0 %v1028_v3 }
 0x264   : > { %v1027_v4 = vpop.xlane.xlu0 %1026 }
 0x265   : > { %v1032_v5 = vmul.f32 0.03125, %v1027_v4 }
 0x267   : > { %v1034_v6 = vsub.f32 %v1020_v0, %v1032_v5 }
 0x268   : > { %v1030_v7 = vpop.xlane.xlu0 %1029 }
 0x269   : > { %v1033_v8 = vmul.f32 0.03125, %v1030_v7  ;;  %v1036_v9 = vmul.f32 %v1034_v6, %v1034_v6 }
 0x26b   : > { %v1035_v10 = vsub.f32 %v1021_v1, %v1033_v8  ;;  %v1038_v11 = vsel %vm1024_vm0, %v1036_v9, 0.0 }
 0x26c   : > { %1039 = vadd.xlane.f32.xlu1 %v1038_v11 }
 0x26d   : > { %v1037_v12 = vmul.f32 %v1035_v10, %v1035_v10 }
 0x26f   : > { %v1041_v13 = vsel %vm1024_vm0, %v1037_v12, 0.0 }
 0x270   : > { %1042 = vadd.xlane.f32.xlu1 %v1041_v13 }
 0x2f9   : > { %v1040_v19 = vpop.xlane.xlu1 %1039 }
 0x2fa   : > { %v1044_v20 = vmul.f32 0.03125, %v1040_v19 }
 0x2fc   : > { %v1046_v21 = vadd.f32 1e-05, %v1044_v20 }
 0x2fd   : > { %v1043_v22 = vpop.xlane.xlu1 %1042 }
 0x2fe   : > { %3958 = vrsqrt.f32 %v1046_v21  ;;  %v1045_v23 = vmul.f32 0.03125, %v1043_v22 }
 0x300   : > { %v1047_v24 = vadd.f32 1e-05, %v1045_v23 }
 0x302   : > { %3960 = vrsqrt.f32 %v1047_v24 }
 0x308   : > { %v3959_v25 = vpop.eup %3958 }
 0x309   : > { %v1050_v26 = vmul.f32 %v3959_v25, %v1034_v6 }
 0x30b   : > { %v1058_v30 = vmul.f32 %v3350_v27, %v1050_v26 }
 0x30c   : > { %v3961_v28 = vpop.eup %3960 }
 0x30d   : > { %v1051_v29 = vmul.f32 %v3961_v28, %v1035_v10  ;;  %v1066_v33 = vadd.f32 %v3351_v31, %v1058_v30 }
 0x30f   : > { %v1059_v32 = vmul.f32 %v3350_v27, %v1051_v29 }
 0x311   : > { %v1067_v34 = vadd.f32 %v3351_v31, %v1059_v32 }
 0x313   : > { %v1068_v37 = vpack.c.bf16 %v1067_v34, %v1066_v33 }
 0x315   : > { %3512 = vmatmul.mubr.msk.bf16.vlgmr.msra.gmra.mrb[0].mxu0 %vm1024_vm0, %v1068_v37  ;;  %3520 = vmatmul.mubr.msk.bf16.vlgmr.msra.gmra.mrb[0].mxu1 %vm1024_vm0, %v1068_v37 }
 0x316   : > { %3524 = vmatpush3.bf16.msra.mxu0 %v3956_v35  ;;  %3530 = vmatpush3.bf16.msra.mxu1 %v3957_v36 }
 0x317   : > { %3525 = vmatprep.mubr.msk.bf16.mxu0 %vm4557_vm1, %v4556_v16  ;;  %3531 = vmatprep.mubr.msk.bf16.mxu1 %vm4557_vm1, %v4556_v16 }
 0x31d   : > { %3526 = vmatmul.mubr.msk.bf16.vlgmr.msra.gmra.mrb[4].mxu0 %vm1200_vm2, %v1191_v39  ;;  %3532 = vmatmul.mubr.msk.bf16.vlgmr.msra.gmra.mrb[4].mxu1 %vm1200_vm2, %v1191_v39 }
 0x3e8   : > { %v1122_v40 = vpop.f32.mrb[0].mxu0  ;;  %v1181_v41 = vpop.f32.mrb[0].mxu1 }
 0x3e9   : > { %v3513_v42 = vpop.f32.mrb[1].mxu0  ;;  %v3521_v43 = vpop.f32.mrb[1].mxu1 }
 0x3ea   : > { %v1125_v44 = vpop.f32.mrb[2].mxu0  ;;  %v1184_v45 = vpop.f32.mrb[2].mxu1 }
 0x3eb   : > { %v1129_v46 = vpack.c.bf16 %v1125_v44, %v1122_v40  ;;  %v1188_v47 = vpack.c.bf16 %v1184_v45, %v1181_v41  ;;  %v3514_v48 = vpop.f32.mrb[3].mxu0  ;;  %v3522_v49 = vpop.f32.mrb[3].mxu1 }
 0x3ed   : > { %1130 = vst.msk [vmem:[#allocation2] sm:$0xff] %vm1024_vm0, %v1129_v46  ;;  %1189 = vst.msk [vmem:[#allocation3] sm:$0xff] %vm1024_vm0, %v1188_v47 }
 0x3f0   : > { %v1238_v50 = vpop.f32.mrb[4].mxu0  ;;  %v1289_v51 = vpop.f32.mrb[4].mxu1 }
 0x3f1   : > { %v1244_v52 = vpack.c.bf16 %v1238_v50, %v1238_v50  ;;  %v1295_v53 = vpack.c.bf16 %v1289_v51, %v1289_v51  ;;  %v3527_v54 = vpop.f32.mrb[5].mxu0  ;;  %v3533_v55 = vpop.f32.mrb[5].mxu1 }
 0x3f2   : > { %v1241_v56 = vpop.f32.mrb[6].mxu0  ;;  %v1292_v57 = vpop.f32.mrb[6].mxu1 }
 0x3f3   : > { %1246 = vst.msk [vmem:[#allocation4] sm:$0xf] %vm1245_vm3, %v1244_v52  ;;  %1296 = vst.msk [vmem:[#allocation5] sm:$0xf] %vm1245_vm3, %v1295_v53  ;;  %v3528_v58 = vpop.f32.mrb[7].mxu0  ;;  %v3534_v59 = vpop.f32.mrb[7].mxu1 }
 0x3f4 PF: > { %v5146_v60 = vld [vmem:[%s5123_s6] sm:$0xff]  ;;  %vm1300_vm4 = vcmask 261120   ;;  %v4558_v4 = vmov 0.0   ;;  %vm4559_vm5 = vmmov 0   ;;  %v3362_v10 = vld [vmem:[#allocation6] ss:$0 sm:$0xff] }
 0x3f5   : > { %v1301_v61 = vsel %vm1300_vm4, %v5146_v60, 0.0  ;;  %v3962_v3 = vld [vmem:[#allocation11] sm:$0xff]   ;;  %3535 = vmatprep.subr.bf16.mxu1 %v4558_v4  ;;  %3539 = vmatprep.mubr.msk.bf16.mxu1 %vm4559_vm5, %v4558_v4  ;;  %v3963_v5 = vld [vmem:[#allocation11 + $0x8] sm:$0xff]   ;;  %v3363_v12 = vld [vmem:[#allocation9] ss:$0 sm:$0xff]  ;;  %vm1394_vm6 = vcmask 64512  }
 0x3f6   : > { %1302 = vadd.xlane.f32.xlu0 %v1301_v61  ;;  %3536 = vmatpush3.bf16.msra.mxu1 %v3962_v3  ;;  %v5160_v14 = vld [vmem:[#allocation2] sm:$0xff]  ;;  %s4560_s5 = smov 120   ;;  %vm1441_vm7 = vcmask 130048   ;;  %v5179_v29 = vld [vmem:[#allocation3] sm:$0xff]  ;;  %s4561_s25 = smov 112   ;;  %vm1616_vm8 = vcmask 1043456  }
 0x3f7   : > { %3561 = vmatprep.subr.bf16.mxu0 %v4558_v4  ;;  %3537 = vmatprep.subr.bf16.mxu1 %v4558_v4  ;;  %v1399_v17 = vsel %vm1394_vm6, %v5160_v14, 0  ;;  %s4562_s9 = smov 104   ;;  %v1498_v52 = vld [vmem:[#allocation15] sm:$0xf]  ;;  %v1612_v57 = vld [vmem:[#allocation15 + $0x4] sm:$0xf] }
 0x3f8   : > { %3563 = vmatprep.mubr.msk.bf16.mxu0 %vm4559_vm5, %v4558_v4  ;;  %v1664_v56 = vsel %vm1616_vm8, %v1498_v52, 0  ;;  %v1618_v58 = vsel %vm1616_vm8, %v1612_v57, 0  ;;  %s5626_s24 = sld [smem:[#allocation62_spill]]  ;;  %s5627_s13 = sld [smem:[#allocation65_spill]] }
 0x3f9   : > { %s5628_s27 = sld [smem:[#allocation64_spill]]  ;;  %s5629_s3 = sld [smem:[#allocation68_spill]] }
 0x3fa   : > { %3538 = vmatpush3.bf16.msra.mxu1 %v3963_v5  ;;  %s5631_s1 = sld [smem:[#allocation67_spill]]  ;;  %s5632_s15 = sld [smem:[#allocation66_spill]] }
 0x3fb   : > { %3543 = vmatprep.subr.bf16.mxu1 %v4558_v4  ;;  %s3423_s0 = sshll.u32 %s4526_s7, 1  ;;  %s3069_s20 = sshll.u32 %s997_s11, 4  ;;  %s5450_s20 = int_to_ptr.vmem [resolvable:$true] %s3069_s20 }
 0x3fc   : > { %s3065_s16 = sadd.s32 %s4522_s30, %s3423_s0  ;;  %s5635_s10 = sld [smem:[#allocation70_spill]] }
 0x3fd   : > { %s5636_s30 = sand.u32 1, %s4514_s2   ;;  %s4563_s18 = smov [#allocation29]  }
 0x3fe   : > { %s4416_s26 = sshll.u32 %s4563_s18, 4  ;;  %s4417_s26 = int_to_ptr.vmem [resolvable:$false] %s4416_s26 }
 0x3ff   : > { %s5630_s8 = smov %s5629_s3  ;;  %p4419_p6 = scmp.lt.s32.totalorder %s5450_s20, %s4417_s26 }
 0x483   : > { %v1303_v62 = vpop.xlane.xlu0 %1302 }
 0x484   : > { %v1305_v63 = vmul.f32 0.03125, %v1303_v62 }
 0x486   : > { %v1306_v0 = vsub.f32 %v5146_v60, %v1305_v63 }
 0x488   : > { %v1307_v1 = vmul.f32 %v1306_v0, %v1306_v0 }
 0x48a   : > { %v1308_v2 = vsel %vm1300_vm4, %v1307_v1, 0.0 }
 0x48b   : > { %1309 = vadd.xlane.f32.xlu0 %v1308_v2 }
 0x518   : > { %v1310_v6 = vpop.xlane.xlu0 %1309 }
 0x519   : > { %v1311_v7 = vmul.f32 0.03125, %v1310_v6 }
 0x51b   : > { %v1312_v8 = vadd.f32 1e-05, %v1311_v7 }
 0x51d   : > { %3980 = vrsqrt.f32 %v1312_v8 }
 0x527   : > { %v3981_v9 = vpop.eup %3980 }
 0x528   : > { %v1314_v11 = vmul.f32 %v3981_v9, %v1306_v0 }
 0x52a   : > { %v1321_v13 = vmul.f32 %v3362_v10, %v1314_v11 }
 0x52c   : > { %v1328_v15 = vadd.f32 %v3363_v12, %v1321_v13 }
 0x52e   : > { %v1329_v16 = vpack.c.bf16 %v1328_v15, %v1328_v15 }
 0x530   : > { %3540 = vmatmul.mubr.msk.bf16.vlgmr.msra.gmra.mrb[0].mxu1 %vm1300_vm4, %v1329_v16 }
 0x531   : > { %3544 = vmatpush3.bf16.xpose.msra.mxu1 %v1399_v17  ;;  %3545 = vmatprep.mubr.msk.bf16.mxu1 %vm4559_vm5, %v4558_v4 }
 0x532   : > { %3549 = vmatprep.subr.bf16.mxu1 %v4558_v4 }
 0x603   : > { %v1383_v18 = vpop.f32.mrb[0].mxu1 }
 0x604   : > { %v1390_v19 = vmul.f32 0.35355338, %v1383_v18  ;;  %v3541_v20 = vpop.f32.mrb[1].mxu1 }
 0x605   : > { %v1386_v21 = vpop.f32.mrb[2].mxu1 }
 0x606   : > { %v5168_v22 = vpack.c.bf16 %v1390_v19, %v1390_v19  ;;  %v3542_v23 = vpop.f32.mrb[3].mxu1 }
 0x608   : > { %1500 = vrot.lane.b32.xlu0 %v5168_v22, %s4560_s5  ;;  %3546 = vmatmul.mubr.msk.bf16.vlgmr.msra.gmra.mrb[4].mxu1 %vm1394_vm6, %v5168_v22 }
 0x609   : > { %3551 = vmatprep.mubr.msk.bf16.mxu1 %vm4559_vm5, %v4558_v4  ;;  %3550 = vmatpush3.bf16.msra.mxu1 %v5179_v29 }
 0x60a   : > { %3555 = vmatprep.subr.bf16.mxu1 %v4558_v4 }
 0x60c   : > { %1562 = vrot.lane.b32.xlu0 %v5179_v29, %s4560_s5 }
 0x67a   : > { %v1501_v37 = vpop.permute.xlu0 %1500 }
 0x67e   : > { %v1563_v47 = vpop.permute.xlu0 %1562 }
 0x67f   : > { %3562 = vmatpush3.bf16.msra.mxu0 %v1563_v47 }
 0x680   : > { %3573 = vmatprep.subr.bf16.mxu0 %v4558_v4 }
 0x6db   : > { %v1435_v24 = vpop.f32.mrb[4].mxu1 }
 0x6dc   : > { %v3547_v25 = vpop.f32.mrb[5].mxu1  ;;  %v1442_v26 = vsel %vm1441_vm7, %v1435_v24, -inf }
 0x6dd   : > { %1443 = vmax.xlane.f32.xlu1 %v1442_v26  ;;  %v1438_v27 = vpop.f32.mrb[6].mxu1 }
 0x6de   : > { %v3548_v28 = vpop.f32.mrb[7].mxu1 }
 0x6ee   : > { %1503 = vrot.lane.b32.xlu1 %v5160_v14, %s4560_s5 }
 0x76a   : > { %v1444_v30 = vpop.xlane.xlu1 %1443 }
 0x76b   : > { %v1445_v31 = vsub.f32 %v1435_v24, %v1444_v30 }
 0x76d   : > { %v1446_v32 = vmul.f32 1.442695, %v1445_v31 }
 0x76e   : > { %v1504_v33 = vpop.permute.xlu1 %1503 }
 0x76f   : > { %3982 = vpow2.f32 %v1446_v32  ;;  %v1509_v35 = vsel %vm1394_vm6, %v1504_v33, 0 }
 0x779   : > { %v3983_v34 = vpop.eup %3982 }
 0x77a   : > { %v1451_v36 = vpack.c.bf16 %v3983_v34, %v3983_v34  ;;  %v1448_v48 = vsel %vm1441_vm7, %v3983_v34, 0.0 }
 0x77c   : > { %3552 = vmatmul.mubr.msk.bf16.vlgmr.msra.gmra.mrb[8].mxu1 %vm1441_vm7, %v1451_v36 }
 0x77d   : > { %3556 = vmatpush3.bf16.xpose.msra.mxu1 %v1509_v35  ;;  %3557 = vmatprep.mubr.msk.bf16.mxu1 %vm4559_vm5, %v4558_v4 }
 0x77e   : > { %3567 = vmatprep.subr.bf16.mxu1 %v4558_v4 }
 0x784   : > { %3558 = vmatmul.mubr.msk.bf16.vlgmr.msra.gmra.mrb[12].mxu1 %vm1394_vm6, %v1501_v37  ;;  %v1816_v37 = vld [vmem:[#allocation15 + $0x8] sm:$0xf] }
 0x785   : > { %3569 = vmatprep.mubr.msk.bf16.mxu1 %vm4559_vm5, %v4558_v4  ;;  %3568 = vmatpush3.bf16.msra.mxu1 %v1618_v58  ;;  %v1974_v58 = vld [vmem:[#allocation15 + $0xc] sm:$0xf] }
 0x786   : > { %3579 = vmatprep.subr.bf16.mxu1 %v4558_v4 }
 0x84f   : > { %v1489_v38 = vpop.f32.mrb[8].mxu1 }
 0x850   : > { %v3553_v39 = vpop.f32.mrb[9].mxu1 }
 0x851   : > { %v1492_v40 = vpop.f32.mrb[10].mxu1 }
 0x852   : > { %v3554_v41 = vpop.f32.mrb[11].mxu1 }
 0x857   : > { %v1545_v42 = vpop.f32.mrb[12].mxu1 }
 0x858   : > { %v3559_v43 = vpop.f32.mrb[13].mxu1  ;;  %v1551_v44 = vsel %vm1441_vm7, %v1545_v42, -inf }
 0x859   : > { %1552 = vmax.xlane.f32.xlu1 %v1551_v44  ;;  %v1548_v45 = vpop.f32.mrb[14].mxu1 }
 0x85a   : > { %v3560_v46 = vpop.f32.mrb[15].mxu1 }
 0x86a   : > { %1708 = vrot.lane.b32.xlu1 %v5160_v14, %s4561_s25 }
 0x88e   : > { %1449 = vadd.xlane.f32.xlu1 %v1448_v48 }
 0x89f   : > { %1766 = vrot.lane.b32.xlu1 %v5179_v29, %s4561_s25 }
 0x8a3   : > { %1864 = vrot.lane.b32.xlu1 %v5168_v22, %s4562_s9 }
 0x8e6   : > { %v1553_v49 = vpop.xlane.xlu1 %1552 }
 0x8e7   : > { %v1554_v50 = vsub.f32 %v1545_v42, %v1553_v49 }
 0x8e9   : > { %v1555_v51 = vmul.f32 1.442695, %v1554_v50 }
 0x8ea   : > { %v1709_v59 = vpop.permute.xlu1 %1708 }
 0x8eb   : > { %3984 = vpow2.f32 %v1555_v51  ;;  %v1714_v9 = vsel %vm1394_vm6, %v1709_v59, 0  ;;  %v1979_v59 = vsel %vm1616_vm8, %v1974_v58, 0 }
 0x8f5   : > { %v3985_v53 = vpop.eup %3984 }
 0x8f6   : > { %v1557_v54 = vsel %vm1441_vm7, %v3985_v53, 0.0  ;;  %v1560_v55 = vpack.c.bf16 %v3985_v53, %v3985_v53 }
 0x8f7   : > { %1558 = vadd.xlane.f32.xlu0 %v1557_v54 }
 0x8f8   : > { %3564 = vmatmul.mubr.msk.bf16.vlgmr.msra.gmra.mrb[0].mxu0 %vm1441_vm7, %v1560_v55 }
 0x8f9   : > { %3574 = vmatpush3.bf16.msra.mxu0 %v1664_v56  ;;  %3575 = vmatprep.mubr.msk.bf16.mxu0 %vm4559_vm5, %v4558_v4 }
 0x8fa   : > { %3585 = vmatprep.subr.bf16.mxu0 %v4558_v4 }
 0x90d   : > { %1706 = vrot.lane.b32.xlu0 %v5168_v22, %s4561_s25 }
 0x91b   : > { %v1450_v61 = vpop.xlane.xlu1 %1449 }
 0x91c   : > { %3986 = vrcp.f32 %v1450_v61 }
 0x91f   : > { %v1767_v1 = vpop.permute.xlu1 %1766 }
 0x926   : > { %v3987_v62 = vpop.eup %3986 }
 0x927   : > { %v1496_v63 = vmul.f32 %v3987_v62, %v1489_v38  ;;  %v1821_v38 = vsel %vm1616_vm8, %v1816_v37, 0 }
 0x929   : > { %v1497_v0 = vpack.c.bf16 %v1496_v63, %v1496_v63 }
 0x92b   : > { %3576 = vmatmul.mubr.msk.bf16.vlgmr.msra.gmra.mrb[4].mxu0 %vm1394_vm6, %v1497_v0 }
 0x92c   : > { %3586 = vmatpush3.bf16.msra.mxu0 %v1767_v1  ;;  %3587 = vmatprep.mubr.msk.bf16.mxu0 %vm4559_vm5, %v4558_v4 }
 0x92d   : > { %3597 = vmatprep.subr.bf16.mxu0 %v4558_v4 }
 0x984   : > { %v1559_v2 = vpop.xlane.xlu0 %1558 }
 0x985   : > { %3988 = vrcp.f32 %v1559_v2 }
 0x988   : > { %v1707_v12 = vpop.permute.xlu0 %1706 }
 0x98f   : > { %v3989_v3 = vpop.eup %3988 }
 0x9cb   : > { %v1602_v5 = vpop.f32.mrb[0].mxu0 }
 0x9cc   : > { %v1609_v6 = vmul.f32 %v3989_v3, %v1602_v5  ;;  %v3565_v7 = vpop.f32.mrb[1].mxu0 }
 0x9cd   : > { %v1605_v8 = vpop.f32.mrb[2].mxu0 }
 0x9ce   : > { %v1610_v10 = vpack.c.bf16 %v1609_v6, %v1609_v6  ;;  %v3566_v11 = vpop.f32.mrb[3].mxu0 }
 0x9cf   : > { %v3379_v11 = vld [vmem:[#allocation17] ss:$0 sm:$0xff] }
 0x9d0   : > { %3570 = vmatmul.mubr.msk.bf16.vlgmr.msra.gmra.mrb[16].mxu1 %vm1394_vm6, %v1610_v10 }
 0x9d1   : > { %3580 = vmatpush3.bf16.xpose.msra.mxu1 %v1714_v9  ;;  %3581 = vmatprep.mubr.msk.bf16.mxu1 %vm4559_vm5, %v4558_v4 }
 0x9d2   : > { %3591 = vmatprep.subr.bf16.mxu1 %v4558_v4 }
 0x9d8   : > { %3582 = vmatmul.mubr.msk.bf16.vlgmr.msra.gmra.mrb[20].mxu1 %vm1394_vm6, %v1707_v12 }
 0x9d9   : > { %3593 = vmatprep.mubr.msk.bf16.mxu1 %vm4559_vm5, %v4558_v4  ;;  %3592 = vmatpush3.bf16.msra.mxu1 %v1821_v38 }
 0x9da   : > { %3603 = vmatprep.subr.bf16.mxu1 %v4558_v4 }
 0x9fe   : > { %v1700_v13 = vpop.f32.mrb[4].mxu0 }
 0x9ff   : > { %v3577_v15 = vpop.f32.mrb[5].mxu0 }
 0xa00   : > { %v1703_v16 = vpop.f32.mrb[6].mxu0 }
 0xa01   : > { %v3578_v17 = vpop.f32.mrb[7].mxu0 }
 0xaa3   : > { %v1654_v18 = vpop.f32.mrb[16].mxu1 }
 0xaa4   : > { %v5224_v19 = vadd.f32 %v1700_v13, %v1654_v18  ;;  %v3571_v20 = vpop.f32.mrb[17].mxu1 }
 0xaa5   : > { %v1657_v21 = vpop.f32.mrb[18].mxu1 }
 0xaa6   : > { %v3572_v22 = vpop.f32.mrb[19].mxu1 }
 0xaab   : > { %v1750_v23 = vpop.f32.mrb[20].mxu1 }
 0xaac   : > { %v3583_v24 = vpop.f32.mrb[21].mxu1  ;;  %v1756_v25 = vsel %vm1441_vm7, %v1750_v23, -inf }
 0xaad   : > { %1757 = vmax.xlane.f32.xlu0 %v1756_v25  ;;  %v1753_v26 = vpop.f32.mrb[22].mxu1 }
 0xaae   : > { %v3584_v27 = vpop.f32.mrb[23].mxu1  ;;  %v3964_v26 = vld [vmem:[%s5518_s12] sm:$0xff]  }
 0xaaf   : > { %v2122_v27 = vld [vmem:[#allocation4] sm:$0xf] }
 0xac3   : > { %1866 = vrot.lane.b32.xlu0 %v5160_v14, %s4562_s9  ;;  %v1865_v14 = vpop.permute.xlu1 %1864 }
 0xb3a   : > { %v1758_v28 = vpop.xlane.xlu0 %1757 }
 0xb3b   : > { %v1759_v30 = vsub.f32 %v1750_v23, %v1758_v28  ;;  %v5272_v28 = vcombine.low %v2122_v27, %v2122_v27 }
 0xb3d   : > { %v1760_v31 = vmul.f32 1.442695, %v1759_v30  ;;  %v2128_v30 = vsel %vm1394_vm6, %v2122_v27, 0 }
 0xb3e   : > { %v1867_v32 = vpop.permute.xlu0 %1866 }
 0xb3f   : > { %3990 = vpow2.f32 %v1760_v31  ;;  %v1872_v34 = vsel %vm1394_vm6, %v1867_v32, 0 }
 0xb49   : > { %v3991_v33 = vpop.eup %3990 }
 0xb4a   : > { %v1762_v35 = vsel %vm1441_vm7, %v3991_v33, 0.0  ;;  %v1765_v36 = vpack.c.bf16 %v3991_v33, %v3991_v33 }
 0xb4b   : > { %1763 = vadd.xlane.f32.xlu1 %v1762_v35  ;;  %v3380_v35 = vld [vmem:[#allocation18] ss:$0 sm:$0xff] }
 0xb4c   : > { %3588 = vmatmul.mubr.msk.bf16.vlgmr.msra.gmra.mrb[8].mxu0 %vm1441_vm7, %v1765_v36 }
 0xb4d   : > { %3598 = vmatpush3.bf16.xpose.msra.mxu0 %v1872_v34  ;;  %3599 = vmatprep.mubr.msk.bf16.mxu0 %vm4559_vm5, %v4558_v4 }
 0xb4e   : > { %3609 = vmatprep.subr.bf16.mxu0 %v4558_v4 }
 0xb54   : > { %3600 = vmatmul.mubr.msk.bf16.vlgmr.msra.gmra.mrb[12].mxu0 %vm1394_vm6, %v1865_v14  ;;  %v3381_v14 = vld [vmem:[#allocation20] ss:$0 sm:$0xff] }
 0xb55   : > { %3611 = vmatprep.mubr.msk.bf16.mxu0 %vm4559_vm5, %v4558_v4  ;;  %3610 = vmatpush3.bf16.msra.mxu0 %v1979_v59 }
 0xb56   : > { %3623 = vmatprep.subr.bf16.mxu0 %v4558_v4 }
 0xb5c   : > { %1924 = vrot.lane.b32.xlu1 %v5179_v29, %s4562_s9 }
 0xbd8   : > { %v1764_v39 = vpop.xlane.xlu1 %1763 }
 0xbd9   : > { %3992 = vrcp.f32 %v1764_v39 }
 0xbdc   : > { %v1925_v51 = vpop.permute.xlu1 %1924 }
 0xbe3   : > { %v3993_v40 = vpop.eup %3992 }
 0xc1f   : > { %v1806_v41 = vpop.f32.mrb[8].mxu0 }
 0xc20   : > { %v1813_v42 = vmul.f32 %v3993_v40, %v1806_v41  ;;  %v3589_v43 = vpop.f32.mrb[9].mxu0 }
 0xc21   : > { %v1809_v44 = vpop.f32.mrb[10].mxu0 }
 0xc22   : > { %v1814_v45 = vpack.c.bf16 %v1813_v42, %v1813_v42  ;;  %v3590_v46 = vpop.f32.mrb[11].mxu0 }
 0xc24   : > { %3594 = vmatmul.mubr.msk.bf16.vlgmr.msra.gmra.mrb[24].mxu1 %vm1394_vm6, %v1814_v45 }
 0xc25   : > { %3605 = vmatprep.mubr.msk.bf16.mxu1 %vm4559_vm5, %v4558_v4  ;;  %3604 = vmatpush3.bf16.msra.mxu1 %v1925_v51 }
 0xc26   : > { %3615 = vmatprep.subr.bf16.mxu1 %v4558_v4 }
 0xc27   : > { %v1908_v29 = vpop.f32.mrb[12].mxu0 }
 0xc28   : > { %v3601_v47 = vpop.f32.mrb[13].mxu0  ;;  %v1914_v48 = vsel %vm1441_vm7, %v1908_v29, -inf }
 0xc29   : > { %1915 = vmax.xlane.f32.xlu0 %v1914_v48  ;;  %v1911_v49 = vpop.f32.mrb[14].mxu0 }
 0xc2a   : > { %v3602_v50 = vpop.f32.mrb[15].mxu0 }
 0xcb6   : > { %v1916_v52 = vpop.xlane.xlu0 %1915 }
 0xcb7   : > { %v1917_v53 = vsub.f32 %v1908_v29, %v1916_v52 }
 0xcb9   : > { %v1918_v54 = vmul.f32 1.442695, %v1917_v53  ;;  %v2123_v53 = vld [vmem:[#allocation5] sm:$0xf] }
 0xcbb   : > { %3994 = vpow2.f32 %v1918_v54  ;;  %v5291_v54 = vcombine.low %v2123_v53, %v2123_v53 }
 0xcc5   : > { %v3995_v55 = vpop.eup %3994 }
 0xcc6   : > { %v1920_v56 = vsel %vm1441_vm7, %v3995_v55, 0.0  ;;  %v1923_v57 = vpack.c.bf16 %v3995_v55, %v3995_v55  ;;  %v2184_v55 = vsel %vm1616_vm8, %v2123_v53, 0 }
 0xcc7   : > { %1921 = vadd.xlane.f32.xlu0 %v1920_v56 }
 0xcc8   : > { %3606 = vmatmul.mubr.msk.bf16.vlgmr.msra.gmra.mrb[28].mxu1 %vm1441_vm7, %v1923_v57 }
 0xcc9   : > { %3619 = vmatprep.mubr.msk.bf16.mxu1 %vm4559_vm5, %v4558_v4  ;;  %3616 = vmatpush3.bf16.msra.mxu1 %v3964_v26 }
 0xcca   : > { %3617 = vmatprep.subr.bf16.mxu1 %v4558_v4 }
 0xcf7   : > { %v1857_v61 = vpop.f32.mrb[24].mxu1 }
 0xcf8   : > { %v1863_v62 = vadd.f32 %v1857_v61, %v5224_v19  ;;  %v3595_v63 = vpop.f32.mrb[25].mxu1 }
 0xcf9   : > { %v1860_v0 = vpop.f32.mrb[26].mxu1 }
 0xcfa   : > { %v3596_v1 = vpop.f32.mrb[27].mxu1 }
 0xd54   : > { %v1922_v2 = vpop.xlane.xlu0 %1921 }
 0xd55   : > { %3996 = vrcp.f32 %v1922_v2 }
 0xd5f   : > { %v3997_v3 = vpop.eup %3996 }
 0xd9b   : > { %v1964_v5 = vpop.f32.mrb[28].mxu1 }
 0xd9c   : > { %v1971_v6 = vmul.f32 %v3997_v3, %v1964_v5  ;;  %v3607_v7 = vpop.f32.mrb[29].mxu1 }
 0xd9d   : > { %v1967_v8 = vpop.f32.mrb[30].mxu1 }
 0xd9e   : > { %v1972_v9 = vpack.c.bf16 %v1971_v6, %v1971_v6  ;;  %v3608_v10 = vpop.f32.mrb[31].mxu1 }
 0xd9f   : > { %v2229_v10 = vld [vmem:[%s5626_s24] sm:$0xf] }
 0xda0   : > { %3612 = vmatmul.mubr.msk.bf16.vlgmr.msra.gmra.mrb[16].mxu0 %vm1394_vm6, %v1972_v9 }
 0xda1   : > { %3625 = vmatprep.mubr.msk.bf16.mxu0 %vm4559_vm5, %v4558_v4  ;;  %3624 = vmatpush3.bf16.xpose.msra.mxu0 %v2128_v30 }
 0xda2   : > { %3635 = vmatprep.subr.bf16.mxu0 %v4558_v4 }
 0xe73   : > { %v2015_v12 = vpop.f32.mrb[16].mxu0 }
 0xe74   : > { %v2021_v13 = vadd.f32 %v2015_v12, %v1863_v62  ;;  %v3613_v15 = vpop.f32.mrb[17].mxu0 }
 0xe75   : > { %v2018_v16 = vpop.f32.mrb[18].mxu0  ;;  %v2400_v15 = vsel %vm1616_vm8, %v2229_v10, 0 }
 0xe76   : > { %v2028_v17 = vadd.f32 %v3379_v11, %v2021_v13  ;;  %v3614_v18 = vpop.f32.mrb[19].mxu0  ;;  %v3391_v16 = vld [vmem:[%s5626_s24 + $0x4] sm:$0xf] }
 0xe78   : > { %v5258_v19 = vadd.f32 %v2028_v17, %v5146_v60  ;;  %v3965_v60 = vld [vmem:[%s5518_s12 + $0x8] sm:$0xff]   ;;  %v2354_v17 = vsel %vm1616_vm8, %v3391_v16, 0 }
 0xe79   : > { %3618 = vmatpush3.bf16.msra.mxu1 %v3965_v60 }
 0xe7a   : > { %v2032_v20 = vsel %vm1300_vm4, %v5258_v19, 0.0  ;;  %3629 = vmatprep.subr.bf16.mxu1 %v4558_v4 }
 0xe7b   : > { %2033 = vadd.xlane.f32.xlu0 %v2032_v20 }
 0xf08   : > { %v2034_v21 = vpop.xlane.xlu0 %2033 }
 0xf09   : > { %v2035_v22 = vmul.f32 0.03125, %v2034_v21 }
 0xf0b   : > { %v2036_v23 = vsub.f32 %v5258_v19, %v2035_v22 }
 0xf0d   : > { %v2037_v24 = vmul.f32 %v2036_v23, %v2036_v23 }
 0xf0f   : > { %v2038_v25 = vsel %vm1300_vm4, %v2037_v24, 0.0 }
 0xf10   : > { %2039 = vadd.xlane.f32.xlu0 %v2038_v25 }
 0xf26   : > { %2236 = vrot.lane.b32.xlu0 %v5272_v28, %s4560_s5 }
 0xf9d   : > { %v2040_v31 = vpop.xlane.xlu0 %2039 }
 0xf9e   : > { %v2041_v32 = vmul.f32 0.03125, %v2040_v31 }
 0xfa0   : > { %v2042_v33 = vadd.f32 1e-05, %v2041_v32 }
 0xfa1   : > { %v2237_v41 = vpop.permute.xlu0 %2236 }
 0xfa2   : > { %3998 = vrsqrt.f32 %v2042_v33  ;;  %v2242_v29 = vsel %vm1394_vm6, %v2237_v41, 0 }
 0xfac   : > { %v3999_v34 = vpop.eup %3998 }
 0xfad   : > { %v2044_v36 = vmul.f32 %v3999_v34, %v2036_v23 }
 0xfaf   : > { %v2051_v37 = vmul.f32 %v3380_v35, %v2044_v36 }
 0xfb1   : > { %v2058_v38 = vadd.f32 %v3381_v14, %v2051_v37 }
 0xfb3   : > { %v2059_v39 = vpack.c.bf16 %v2058_v38, %v2058_v38 }
 0xfb5   : > { %3620 = vmatmul.mubr.msk.bf16.vlgmr.msra.gmra.mrb[32].mxu1 %vm1300_vm4, %v2059_v39 }
 0xfb6   : > { %3631 = vmatprep.mubr.msk.bf16.mxu1 %vm4559_vm5, %v4558_v4  ;;  %3630 = vmatpush3.bf16.msra.mxu1 %v2184_v55 }
 0xfb7   : > { %3641 = vmatprep.subr.bf16.mxu1 %v4558_v4 }
0x1088   : > { %v2113_v40 = vpop.f32.mrb[32].mxu1 }
0x1089   : > { %v2120_v42 = vmul.f32 0.35355338, %v2113_v40  ;;  %v3621_v43 = vpop.f32.mrb[33].mxu1 }
0x108a   : > { %v2116_v44 = vpop.f32.mrb[34].mxu1 }
0x108b   : > { %v2121_v45 = vpack.c.bf16 %v2120_v42, %v2120_v42  ;;  %v3622_v46 = vpop.f32.mrb[35].mxu1 }
0x108d   : > { %2231 = vrot.lane.b32.xlu1 %v2121_v45, %s4560_s5  ;;  %3626 = vmatmul.mubr.msk.bf16.vlgmr.msra.gmra.mrb[20].mxu0 %vm1394_vm6, %v2121_v45 }
0x108e   : > { %3636 = vmatpush3.bf16.xpose.msra.mxu0 %v2242_v29  ;;  %3637 = vmatprep.mubr.msk.bf16.mxu0 %vm4559_vm5, %v4558_v4 }
0x108f   : > { %3647 = vmatprep.subr.bf16.mxu0 %v4558_v4 }
0x10ff   : > { %v2232_v47 = vpop.permute.xlu1 %2231 }
0x1100   : > { %3638 = vmatmul.mubr.msk.bf16.vlgmr.msra.gmra.mrb[24].mxu0 %vm1394_vm6, %v2232_v47 }
0x1101   : > { %3649 = vmatprep.mubr.msk.bf16.mxu0 %vm4559_vm5, %v4558_v4  ;;  %3648 = vmatpush3.bf16.msra.mxu0 %v2354_v17 }
0x1102   : > { %3659 = vmatprep.subr.bf16.mxu0 %v4558_v4 }
0x1160   : > { %v2164_v48 = vpop.f32.mrb[20].mxu0 }
0x1161   : > { %v3627_v49 = vpop.f32.mrb[21].mxu0  ;;  %v2170_v50 = vsel %vm1394_vm6, %v2164_v48, -inf }
0x1162   : > { %2171 = vmax.xlane.f32.xlu1 %v2170_v50  ;;  %v2167_v51 = vpop.f32.mrb[22].mxu0 }
0x1163   : > { %v3628_v52 = vpop.f32.mrb[23].mxu0 }
0x1173   : > { %2297 = vrot.lane.b32.xlu1 %v5291_v54, %s4560_s5  ;;  %s5633_s5 = sld [smem:[#allocation69_spill]] }
0x1177   : > { %2442 = vrot.lane.b32.xlu1 %v2121_v45, %s4561_s25 }
0x11d3   : > { %v2278_v56 = vpop.f32.mrb[24].mxu0 }
0x11d4   : > { %v3639_v57 = vpop.f32.mrb[25].mxu0  ;;  %v2284_v58 = vsel %vm1394_vm6, %v2278_v56, -inf }
0x11d5   : > { %2285 = vmax.xlane.f32.xlu0 %v2284_v58  ;;  %v2281_v59 = vpop.f32.mrb[26].mxu0 }
0x11d6   : > { %v3640_v61 = vpop.f32.mrb[27].mxu0 }
0x11ef   : > { %v2172_v62 = vpop.xlane.xlu1 %2171 }
0x11f0   : > { %v2173_v63 = vsub.f32 %v2164_v48, %v2172_v62 }
0x11f2   : > { %v2174_v0 = vmul.f32 1.442695, %v2173_v63  ;;  %v3396_v63 = vld [vmem:[%s5626_s24 + $0x8] sm:$0xf] }
0x11f3   : > { %v2298_v2 = vpop.permute.xlu1 %2297 }
0x11f4   : > { %4000 = vpow2.f32 %v2174_v0  ;;  %v2303_v3 = vsel %vm1616_vm8, %v2298_v2, 0  ;;  %v2559_v0 = vsel %vm1616_vm8, %v3396_v63, 0 }
0x11f7   : > { %v2443_v18 = vpop.permute.xlu1 %2442 }
0x11fe   : > { %v4001_v1 = vpop.eup %4000 }
0x11ff   : > { %v2176_v5 = vsel %vm1394_vm6, %v4001_v1, 0.0  ;;  %v2179_v6 = vpack.c.bf16 %v4001_v1, %v4001_v1 }
0x1200   : > { %2177 = vadd.xlane.f32.xlu1 %v2176_v5 }
0x1201   : > { %3632 = vmatmul.mubr.msk.bf16.vlgmr.msra.gmra.mrb[36].mxu1 %vm1394_vm6, %v2179_v6 }
0x1202   : > { %3642 = vmatpush3.bf16.msra.mxu1 %v2303_v3  ;;  %3643 = vmatprep.mubr.msk.bf16.mxu1 %vm4559_vm5, %v4558_v4 }
0x1203   : > { %3653 = vmatprep.subr.bf16.mxu1 %v4558_v4 }
0x1211   : > { %2502 = vrot.lane.b32.xlu1 %v5291_v54, %s4561_s25 }
0x1215   : > { %2602 = vrot.lane.b32.xlu1 %v2121_v45, %s4562_s9 }
0x1262   : > { %v2286_v7 = vpop.xlane.xlu0 %2285 }
0x1263   : > { %v2287_v8 = vsub.f32 %v2278_v56, %v2286_v7 }
0x1265   : > { %v2288_v9 = vmul.f32 1.442695, %v2287_v8 }
0x1267   : > { %4002 = vpow2.f32 %v2288_v9 }
0x1271   : > { %v4003_v11 = vpop.eup %4002 }
0x1272   : > { %v2290_v12 = vsel %vm1394_vm6, %v4003_v11, 0.0  ;;  %v2293_v13 = vpack.c.bf16 %v4003_v11, %v4003_v11 }
0x1273   : > { %2291 = vadd.xlane.f32.xlu0 %v2290_v12 }
0x1274   : > { %3644 = vmatmul.mubr.msk.bf16.vlgmr.msra.gmra.mrb[40].mxu1 %vm1394_vm6, %v2293_v13 }
0x1275   : > { %3654 = vmatpush3.bf16.msra.mxu1 %v2400_v15  ;;  %3655 = vmatprep.mubr.msk.bf16.mxu1 %vm4559_vm5, %v4558_v4 }
0x1276   : > { %3665 = vmatprep.subr.bf16.mxu1 %v4558_v4 }
0x1289   : > { %2444 = vrot.lane.b32.xlu0 %v5272_v28, %s4561_s25  ;;  %s5634_s25 = sld [smem:[#allocation45_spill]] }
0x128d   : > { %v2178_v20 = vpop.xlane.xlu1 %2177 }
0x128e   : > { %4004 = vrcp.f32 %v2178_v20 }
0x128f   : > { %p5637_p1 = scmp.ne.s32.totalorder %s5634_s25, 0 }
0x1291   : > { %v2503_v25 = vpop.permute.xlu1 %2502 }
0x1292   : > { %v2508_v60 = vsel %vm1616_vm8, %v2503_v25, 0 }
0x1298   : > { %v4005_v21 = vpop.eup %4004 }
0x12d4   : > { %v2220_v22 = vpop.f32.mrb[36].mxu1 }
0x12d5   : > { %v2227_v23 = vmul.f32 %v4005_v21, %v2220_v22  ;;  %v3633_v24 = vpop.f32.mrb[37].mxu1 }
0x12d6   : > { %v2223_v26 = vpop.f32.mrb[38].mxu1  ;;  %v3400_v24 = vld [vmem:[%s5626_s24 + $0xc] sm:$0xf] }
0x12d7   : > { %v2228_v27 = vpack.c.bf16 %v2227_v23, %v2227_v23  ;;  %v3634_v30 = vpop.f32.mrb[39].mxu1  ;;  %v2719_v25 = vsel %vm1616_vm8, %v3400_v24, 0 }
0x12d9   : > { %3656 = vmatmul.mubr.msk.bf16.vlgmr.msra.gmra.mrb[44].mxu1 %vm1394_vm6, %v2228_v27 }
0x12da   : > { %3666 = vmatpush3.bf16.msra.mxu1 %v2508_v60  ;;  %3667 = vmatprep.mubr.msk.bf16.mxu1 %vm4559_vm5, %v4558_v4 }
0x12db   : > { %3677 = vmatprep.subr.bf16.mxu1 %v4558_v4 }
0x1300   : > { %v2292_v31 = vpop.xlane.xlu0 %2291 }
0x1301   : > { %4006 = vrcp.f32 %v2292_v31 }
0x1304   : > { %v2445_v34 = vpop.permute.xlu0 %2444 }
0x1305   : > { %v2450_v38 = vsel %vm1394_vm6, %v2445_v34, 0 }
0x130b   : > { %v4007_v32 = vpop.eup %4006 }
0x1347   : > { %v2339_v33 = vpop.f32.mrb[40].mxu1 }
0x1348   : > { %v2346_v35 = vmul.f32 %v4007_v32, %v2339_v33  ;;  %v3645_v36 = vpop.f32.mrb[41].mxu1 }
0x1349   : > { %v2342_v14 = vpop.f32.mrb[42].mxu1 }
0x134a   : > { %v2347_v37 = vpack.c.bf16 %v2346_v35, %v2346_v35  ;;  %v3646_v39 = vpop.f32.mrb[43].mxu1 }
0x134b   : > { %v3402_v39 = vld [vmem:[#allocation24] ss:$0 sm:$0xff] }
0x134c   : > { %3650 = vmatmul.mubr.msk.bf16.vlgmr.msra.gmra.mrb[28].mxu0 %vm1394_vm6, %v2347_v37 }
0x134d   : > { %3660 = vmatpush3.bf16.xpose.msra.mxu0 %v2450_v38  ;;  %3661 = vmatprep.mubr.msk.bf16.mxu0 %vm4559_vm5, %v4558_v4 }
0x134e   : > { %3671 = vmatprep.subr.bf16.mxu0 %v4558_v4 }
0x1354   : > { %3662 = vmatmul.mubr.msk.bf16.vlgmr.msra.gmra.mrb[32].mxu0 %vm1394_vm6, %v2443_v18 }
0x1355   : > { %3673 = vmatprep.mubr.msk.bf16.mxu0 %vm4559_vm5, %v4558_v4  ;;  %3672 = vmatpush3.bf16.msra.mxu0 %v2559_v0 }
0x1356   : > { %3683 = vmatprep.subr.bf16.mxu0 %v4558_v4 }
0x13ac   : > { %v2436_v40 = vpop.f32.mrb[44].mxu1 }
0x13ad   : > { %v3657_v41 = vpop.f32.mrb[45].mxu1 }
0x13ae   : > { %v2439_v42 = vpop.f32.mrb[46].mxu1 }
0x13af   : > { %v3658_v43 = vpop.f32.mrb[47].mxu1 }
0x141f   : > { %v2390_v44 = vpop.f32.mrb[28].mxu0 }
0x1420   : > { %v5337_v45 = vadd.f32 %v2436_v40, %v2390_v44  ;;  %v3651_v46 = vpop.f32.mrb[29].mxu0 }
0x1421   : > { %v2393_v29 = vpop.f32.mrb[30].mxu0 }
0x1422   : > { %v3652_v47 = vpop.f32.mrb[31].mxu0 }
0x1427   : > { %v2486_v48 = vpop.f32.mrb[32].mxu0 }
0x1428   : > { %v3663_v49 = vpop.f32.mrb[33].mxu0  ;;  %v2492_v50 = vsel %vm1394_vm6, %v2486_v48, -inf }
0x1429   : > { %2493 = vmax.xlane.f32.xlu0 %v2492_v50  ;;  %v2489_v51 = vpop.f32.mrb[34].mxu0 }
0x142a   : > { %v3664_v52 = vpop.f32.mrb[35].mxu0 }
0x142b   : > { %v3968_v52 = vld [vmem:[#allocation27] sm:$0xff]  }
0x143f   : > { %2604 = vrot.lane.b32.xlu0 %v5272_v28, %s4562_s9  ;;  %v2603_v28 = vpop.permute.xlu1 %2602 }
0x14b6   : > { %v2494_v53 = vpop.xlane.xlu0 %2493 }
0x14b7   : > { %v2495_v55 = vsub.f32 %v2486_v48, %v2494_v53  ;;  %v3969_v53 = vld [vmem:[%s5627_s13] sm:$0xff]  }
0x14b9   : > { %v2496_v56 = vmul.f32 1.442695, %v2495_v55  ;;  %v3971_v55 = vld [vmem:[%s5627_s13 + $0x8] sm:$0xff]  }
0x14ba   : > { %v2605_v57 = vpop.permute.xlu0 %2604 }
0x14bb   : > { %4008 = vpow2.f32 %v2496_v56  ;;  %v2610_v59 = vsel %vm1394_vm6, %v2605_v57, 0 }
0x14c5   : > { %v4009_v58 = vpop.eup %4008 }
0x14c6   : > { %v2498_v61 = vsel %vm1394_vm6, %v4009_v58, 0.0  ;;  %v2501_v62 = vpack.c.bf16 %v4009_v58, %v4009_v58 }
0x14c7   : > { %2499 = vadd.xlane.f32.xlu1 %v2498_v61  ;;  %v3403_v61 = vld [vmem:[#allocation26] ss:$0 sm:$0xff] }
0x14c8   : > { %3668 = vmatmul.mubr.msk.bf16.vlgmr.msra.gmra.mrb[48].mxu1 %vm1394_vm6, %v2501_v62 }
0x14c9   : > { %3678 = vmatpush3.bf16.xpose.msra.mxu1 %v2610_v59  ;;  %3679 = vmatprep.mubr.msk.bf16.mxu1 %vm4559_vm5, %v4558_v4 }
0x14ca   : > { %3689 = vmatprep.subr.bf16.mxu1 %v4558_v4 }
0x14d0   : > { %3680 = vmatmul.mubr.msk.bf16.vlgmr.msra.gmra.mrb[52].mxu1 %vm1394_vm6, %v2603_v28  ;;  %v3404_v28 = vld [vmem:[%s5628_s27] ss:$0 sm:$0xff] }
0x14d1   : > { %3691 = vmatprep.mubr.msk.bf16.mxu1 %vm4559_vm5, %v4558_v4  ;;  %3690 = vmatpush3.bf16.msra.mxu1 %v2719_v25 }
0x14d2   : > { %3703 = vmatprep.subr.bf16.mxu1 %v4558_v4 }
0x14d8   : > { %2662 = vrot.lane.b32.xlu1 %v5291_v54, %s4562_s9  ;;  %s3424_s9 = sshll.u32 %s3065_s16, 7 }
0x14d9   : > { %s5448_s7 = scalar_lea.hbm %s5635_s10, %s3424_s9 }
0x1554   : > { %v2500_v1 = vpop.xlane.xlu1 %2499 }
0x1555   : > { %4010 = vrcp.f32 %v2500_v1 }
0x1558   : > { %v2663_v15 = vpop.permute.xlu1 %2662 }
0x1559   : > { %v2668_v16 = vsel %vm1616_vm8, %v2663_v15, 0 }
0x155f   : > { %v4011_v2 = vpop.eup %4010 }
0x159b   : > { %v2544_v3 = vpop.f32.mrb[48].mxu1 }
0x159c   : > { %v2551_v5 = vmul.f32 %v4011_v2, %v2544_v3  ;;  %v3669_v6 = vpop.f32.mrb[49].mxu1  ;;  %v3972_v2 = vld [vmem:[%s5629_s3] sm:$0xff]   ;;  %v3973_v3 = vld [vmem:[%s5630_s8 + $0x8] sm:$0xff]   ;;  %s3054_s3 = scalar_lea.sflag [#allocation8], %s5636_s30 }
0x159d   : > { %v2547_v7 = vpop.f32.mrb[50].mxu1  ;;  %v3975_v6 = vld [vmem:[%s5630_s8 + $0x18] sm:$0xff]  }
0x159e   : > { %v2552_v8 = vpack.c.bf16 %v2551_v5, %v2551_v5  ;;  %v3670_v9 = vpop.f32.mrb[51].mxu1  ;;  %v3974_v5 = vld [vmem:[%s5630_s8 + $0x10] sm:$0xff]   ;;  %v3976_v7 = vld [vmem:[%s5630_s8 + $0x20] sm:$0xff]  }
0x159f   : > { %v3978_v9 = vld [vmem:[%s5630_s8 + $0x30] sm:$0xff]  }
0x15a0   : > { %3674 = vmatmul.mubr.msk.bf16.vlgmr.msra.gmra.mrb[36].mxu0 %vm1394_vm6, %v2552_v8  ;;  %v3977_v8 = vld [vmem:[%s5630_s8 + $0x28] sm:$0xff]  }
0x15a1   : > { %3685 = vmatprep.mubr.msk.bf16.mxu0 %vm4559_vm5, %v4558_v4  ;;  %3684 = vmatpush3.bf16.msra.mxu0 %v2668_v16 }
0x15a2   : > { %3695 = vmatprep.subr.bf16.mxu0 %v4558_v4 }
0x15a3   : > { %v2646_v54 = vpop.f32.mrb[52].mxu1 }
0x15a4   : > { %v3681_v10 = vpop.f32.mrb[53].mxu1  ;;  %v2652_v11 = vsel %vm1394_vm6, %v2646_v54, -inf }
0x15a5   : > { %2653 = vmax.xlane.f32.xlu0 %v2652_v11  ;;  %v2649_v12 = vpop.f32.mrb[54].mxu1  ;;  %v3409_v10 = vld [vmem:[%s5631_s1] ss:$0 sm:$0xff]  ;;  %s4412_s1 = scalar_lea.vmem %s5450_s20, 128 }
0x15a6   : > { %v3682_v13 = vpop.f32.mrb[55].mxu1  ;;  %p4413_p12 = scmp.ne.s32.totalorder %s5450_s20, %s4412_s1 }
0x15a8   : > { %p4414_p4 = pnand %p4413_p12, %p5637_p1 }
0x15aa   : > { %p4415_p5 = pneg %p4414_p4 }
0x1632   : > { %v2654_v17 = vpop.xlane.xlu0 %2653 }
0x1633   : > { %v2655_v18 = vsub.f32 %v2646_v54, %v2654_v17  ;;  %v3979_v54 = vld [vmem:[%s5630_s8 + $0x38] sm:$0xff]  }
0x1635   : > { %v2656_v20 = vmul.f32 1.442695, %v2655_v18 }
0x1637   : > { %4012 = vpow2.f32 %v2656_v20 }
0x1641   : > { %v4013_v21 = vpop.eup %4012 }
0x1642   : > { %v2658_v22 = vsel %vm1394_vm6, %v4013_v21, 0.0  ;;  %v2661_v23 = vpack.c.bf16 %v4013_v21, %v4013_v21 }
0x1643   : > { %2659 = vadd.xlane.f32.xlu0 %v2658_v22 }
0x1644   : > { %3686 = vmatmul.mubr.msk.bf16.vlgmr.msra.gmra.mrb[40].mxu0 %vm1394_vm6, %v2661_v23 }
0x1645   : > { %3699 = vmatprep.mubr.msk.bf16.mxu0 %vm4559_vm5, %v4558_v4  ;;  %3696 = vmatpush3.bf16.msra.mxu0 %v3969_v53 }
0x1646   : > { %3697 = vmatprep.subr.bf16.mxu0 %v4558_v4 }
0x1649   : > { %3698 = vmatpush3.bf16.msra.mxu0 %v3971_v55 }
0x164a   : > { %3711 = vmatprep.subr.bf16.mxu0 %v4558_v4 }
0x1673   : > { %v2595_v26 = vpop.f32.mrb[36].mxu0 }
0x1674   : > { %v2601_v60 = vadd.f32 %v2595_v26, %v5337_v45  ;;  %v3675_v27 = vpop.f32.mrb[37].mxu0 }
0x1675   : > { %v2598_v30 = vpop.f32.mrb[38].mxu0 }
0x1676   : > { %v3676_v31 = vpop.f32.mrb[39].mxu0 }
0x16d0   : > { %v2660_v32 = vpop.xlane.xlu0 %2659 }
0x16d1   : > { %4014 = vrcp.f32 %v2660_v32 }
0x16db   : > { %v4015_v33 = vpop.eup %4014 }
0x1717   : > { %v2704_v34 = vpop.f32.mrb[40].mxu0 }
0x1718   : > { %v2711_v35 = vmul.f32 %v4015_v33, %v2704_v34  ;;  %v3687_v36 = vpop.f32.mrb[41].mxu0 }
0x1719   : > { %v2707_v14 = vpop.f32.mrb[42].mxu0 }
0x171a   : > { %v2712_v37 = vpack.c.bf16 %v2711_v35, %v2711_v35  ;;  %v3688_v38 = vpop.f32.mrb[43].mxu0  ;;  %v3413_v35 = vld [vmem:[%s5633_s5] ss:$0 sm:$0xff] }
0x171c   : > { %3692 = vmatmul.mubr.msk.bf16.vlgmr.msra.gmra.mrb[56].mxu1 %vm1394_vm6, %v2712_v37 }
0x171d   : > { %3707 = vmatprep.mubr.msk.bf16.mxu1 %vm4559_vm5, %v4558_v4  ;;  %3704 = vmatpush3.bf16.msra.mxu1 %v3968_v52 }
0x171e   : > { %3705 = vmatprep.subr.bf16.mxu1 %v4558_v4 }
0x17ef   : > { %v2755_v40 = vpop.f32.mrb[56].mxu1 }
0x17f0   : > { %v2761_v41 = vadd.f32 %v2755_v40, %v2601_v60  ;;  %v3693_v42 = vpop.f32.mrb[57].mxu1  ;;  %v3405_v60 = vld [vmem:[%s5632_s15] ss:$0 sm:$0xff]  ;;  %s4418_s15 = scalar_lea.vmem %s4417_s26, 256 }
0x17f1   : > { %v2758_v43 = vpop.f32.mrb[58].mxu1  ;;  %p4420_p7 = scmp.lt.s32.totalorder %s4418_s15, %s4412_s1 }
0x17f2   : > { %v2768_v44 = vadd.f32 %v3402_v39, %v2761_v41  ;;  %v3694_v45 = vpop.f32.mrb[59].mxu1 }
0x17f3   : > { %p4421_p9 = por %p4420_p7, %p4419_p6 }
0x17f4   : > { %v5378_v46 = vadd.f32 %v2768_v44, %v5258_v19  ;;  %v3970_v19 = vld [vmem:[#allocation27 + $0x8] sm:$0xff]  }
0x17f5   : > { %3706 = vmatpush3.bf16.msra.mxu1 %v3970_v19  ;;  %p4422_p11 = pnand %p4421_p9, %p4415_p5 }
0x17f6   : > { %v2772_v29 = vsel %vm1300_vm4, %v5378_v46, 0.0 }
0x17f7   : > { %2773 = vadd.xlane.f32.xlu0 %v2772_v29 }
0x1884   : > { %v2774_v47 = vpop.xlane.xlu0 %2773 }
0x1885   : > { %v2775_v48 = vmul.f32 0.03125, %v2774_v47 }
0x1887   : > { %v2776_v49 = vsub.f32 %v5378_v46, %v2775_v48 }
0x1889   : > { %v2777_v50 = vmul.f32 %v2776_v49, %v2776_v49 }
0x188b   : > { %v2778_v51 = vsel %vm1300_vm4, %v2777_v50, 0.0 }
0x188c   : > { %2779 = vadd.xlane.f32.xlu0 %v2778_v51 }
0x1919   : > { %v2780_v56 = vpop.xlane.xlu0 %2779 }
0x191a   : > { %v2781_v57 = vmul.f32 0.03125, %v2780_v56 }
0x191c   : > { %v2782_v58 = vadd.f32 1e-05, %v2781_v57 }
0x191e   : > { %4016 = vrsqrt.f32 %v2782_v58 }
0x1928   : > { %v4017_v59 = vpop.eup %4016 }
0x1929   : > { %v2784_v62 = vmul.f32 %v4017_v59, %v2776_v49 }
0x192b   : > { %v2791_v63 = vmul.f32 %v3403_v61, %v2784_v62 }
0x192d   : > { %v2798_v0 = vadd.f32 %v3404_v28, %v2791_v63 }
0x192f   : > { %v2799_v1 = vpack.c.bf16 %v2798_v0, %v2798_v0 }
0x1931   : > { %3700 = vmatmul.mubr.msk.bf16.vlgmr.msra.gmra.mrb[44].mxu0 %vm1300_vm4, %v2799_v1  ;;  %3708 = vmatmul.mubr.msk.bf16.vlgmr.msra.gmra.mrb[60].mxu1 %vm1300_vm4, %v2799_v1 }
0x1932   : > { %3727 = vmatprep.mubr.msk.bf16.mxu0 %vm4559_vm5, %v4558_v4  ;;  %3712 = vmatpush3.bf16.msra.mxu0 %v3972_v2 }
0x1933   : > { %3713 = vmatprep.subr.bf16.mxu0 %v4558_v4 }
0x1936   : > { %3714 = vmatpush3.bf16.msra.mxu0 %v3973_v3 }
0x1937   : > { %3715 = vmatprep.subr.bf16.mxu0 %v4558_v4 }
0x193a   : > { %3716 = vmatpush3.bf16.msra.mxu0 %v3974_v5 }
0x193b   : > { %3717 = vmatprep.subr.bf16.mxu0 %v4558_v4 }
0x193e   : > { %3718 = vmatpush3.bf16.msra.mxu0 %v3975_v6 }
0x193f   : > { %3719 = vmatprep.subr.bf16.mxu0 %v4558_v4 }
0x1942   : > { %3720 = vmatpush3.bf16.msra.mxu0 %v3976_v7 }
0x1943   : > { %3721 = vmatprep.subr.bf16.mxu0 %v4558_v4 }
0x1946   : > { %3722 = vmatpush3.bf16.msra.mxu0 %v3977_v8 }
0x1947   : > { %3723 = vmatprep.subr.bf16.mxu0 %v4558_v4 }
0x194a   : > { %3724 = vmatpush3.bf16.msra.mxu0 %v3978_v9 }
0x194b   : > { %3725 = vmatprep.subr.bf16.mxu0 %v4558_v4 }
0x194e   : > { %3726 = vmatpush3.bf16.msra.mxu0 %v3979_v54 }
0x1a04   : > { %v2860_v11 = vpop.f32.mrb[44].mxu0  ;;  %v2923_v12 = vpop.f32.mrb[60].mxu1 }
0x1a05   : > { %v2924_v13 = vadd.f32 %v3409_v10, %v2923_v12  ;;  %v3701_v15 = vpop.f32.mrb[45].mxu0  ;;  %v3709_v16 = vpop.f32.mrb[61].mxu1  ;;  %v2861_v31 = vadd.f32 %v3405_v60, %v2860_v11 }
0x1a06   : > { %v2863_v17 = vpop.f32.mrb[46].mxu0  ;;  %v2926_v18 = vpop.f32.mrb[62].mxu1 }
0x1a07   : > { %v2930_v20 = vmul.f32 0.044715, %v2924_v13  ;;  %v3702_v21 = vpop.f32.mrb[47].mxu0  ;;  %v3710_v22 = vpop.f32.mrb[63].mxu1  ;;  %v2929_v27 = vmul.f32 0.5, %v2924_v13 }
0x1a09   : > { %v2931_v23 = vmul.f32 %v2930_v20, %v2924_v13 }
0x1a0b   : > { %v2932_v24 = vmul.f32 %v2931_v23, %v2924_v13 }
0x1a0d   : > { %v2933_v4 = vadd.f32 %v2932_v24, %v2924_v13 }
0x1a0f   : > { %v2934_v25 = vmul.f32 0.7978846, %v2933_v4 }
0x1a11   : > { %4018 = vtanh.f32 %v2934_v25 }
0x1a1b   : > { %v4019_v26 = vpop.eup %4018 }
0x1a1c   : > { %v2936_v30 = vadd.f32 1.0, %v4019_v26 }
0x1a1e   : > { %v2937_v32 = vmul.f32 %v2936_v30, %v2929_v27 }
0x1a20   : > { %v2938_v33 = vmul.f32 %v2937_v32, %v2861_v31 }
0x1a22   : > { %v2939_v34 = vpack.c.bf16 %v2938_v33, %v2938_v33 }
0x1a24   : > { %3728 = vmatmul.mubr.bf16.vlgmr.msra.gmra.mrb[48].mxu0 %v2939_v34 }
0x1af7   : > { %v3045_v36 = vpop.f32.mrb[48].mxu0 }
0x1af8   : > { %v3046_v14 = vadd.f32 %v3413_v35, %v3045_v36  ;;  %v3729_v37 = vpop.f32.mrb[49].mxu0 }
0x1af9   : > { %v3048_v38 = vpop.f32.mrb[50].mxu0 }
0x1afa   : > { %v3051_v39 = vadd.f32 %v3046_v14, %v5378_v46  ;;  %v3730_v40 = vpop.f32.mrb[51].mxu0 }
0x1afc   : > { %3052 = vst.msk [vmem:[%s997_s11] sm:$0xff] %vm1300_vm4, %v3051_v39 }
0x1afd   : > { %4425 = shalt.err (!%p4422_p11)
}
0x1afe   : > { %s4426_s11 = scalar_lea.hbm %s5448_s7, 128  ;;  %s4430_s16 = scalar_lea.hbm %s5635_s10, 512 }
0x1aff   : > { %p4427_p13 = scmp.ne.s32.totalorder %s5448_s7, %s4426_s11  ;;  %p4431_p0 = scmp.lt.u32.totalorder %s5448_s7, %s5635_s10 }
0x1b00   : > { %p4432_p8 = scmp.lt.u32.totalorder %s4430_s16, %s4426_s11  ;;  %p4434_p12 = scmp.lt.u32.totalorder %s4426_s11, %s5448_s7 }
0x1b01   : > { %p4428_p3 = pnand %p4427_p13, %p5637_p1 }
0x1b02   : > { %p4433_p10 = por %p4432_p8, %p4431_p0 }
0x1b03   : > { %p4429_p2 = pneg %p4428_p3 }
0x1b04   : > { %p4435_p4 = por %p4434_p12, %p4433_p10 }
0x1b06   : > { %p4436_p5 = pnand %p4435_p4, %p4429_p2 }
0x1b08   : > { %4439 = shalt.err (!%p4436_p5)
}
0x1b09   : > { %3787 = dma.vmem_to_hbm [thread:$0]  (%p5637_p1), %s5450_s20, 128, %s5448_s7, %s3054_s3  }
0x1b0a PF: > { %s5638_s5 = sld [smem:[#allocation43_spill]]  ;;  %s5639_s9 = sld [smem:[#allocation39_spill]] }
0x1b0b   : > { %s5640_s27 = sld [smem:[#allocation47_spill]] }
0x1b10   : > { %p3864_p6 = scmp.ge.s32.totalorder %s5638_s5, 2  ;;  %s3081_s29 = sand.u32 1, %s5639_s9  }
0x1b11   : > { %p5641_p7 = scmp.ne.s32.totalorder %s5640_s27, 0  ;;  %s3082_s30 = scalar_lea.sflag [#allocation8], %s3081_s29 }
0x1b13   : > { %p3833_p9 = pnand %p3864_p6, %p5641_p7 }
0x1b15   : > { %4505 = dma.done.wait (!%p3833_p9), %s3082_s30, 128  }
0x1b16   : > { %4507 = vsyncadd (!%p3833_p9), %s3082_s30, 4294967168  ;;  %s46_s1 = sadd.s32 1, %s5638_s5   ;;  %s5642_s18 = sld [smem:[#allocation40_spill]] }
0x1b17   : > { %p43_p11 = scmp.ge.s32.totalorder %s46_s1, 6   ;;  %s5643_s6 = sld [smem:[#allocation48_spill]] }
0x1b18   : > { %s5644_s30 = sld [smem:[#allocation41_spill]]  ;;  %s5645_s7 = sld [smem:[#allocation42_spill]] }
0x1b19   : > { %s5646_s3 = sld [smem:[#allocation44_spill]]  ;;  %s5647_s26 = sld [smem:[#allocation46_spill]] }
0x1b1a   : > { %s5648_s29 = smov %s4514_s2  ;;  %45 = sbr.rel (!%p43_p11) target bundleno = 36 (0x24), region = 228 }
0x1b1c   : > { %s5649_s2 = smov %s5642_s18 }
0x1b21   :  { %3087 = vsyncpa [#allocation7], 1 }
0x1b22   :  { %3089 = vsyncpa [#allocation7 + $0x1], 1 }
0x1b23   :  { %3090 = vsyncpa [#allocation10], 1 }
0x1b24   :  { %3091 = vsyncpa [#allocation13], 1 }
0x1b25   :  { %3092 = vsyncpa [#allocation16], 1 }
0x1b26   :  { %3093 = vsyncpa [#allocation19], 1 }
0x1b27   :  { %3094 = vsyncpa [#allocation22], 1 }
0x1b28   :  { %3095 = vsyncpa [#allocation25], 1 }
0x1b29   :  { %3096 = vsyncpa [#allocation28], 1 }
0x1b2a   :  { %3097 = vsyncpa [#allocation8], 1 }
0x1b2b   :  { %3099 = vsyncpa [#allocation8 + $0x1], 1 }

</bundles_post_ra>
